<compile_context>
chip_gen: v5e
topology: v5e:2x2
jax: 0.10.0
libtpu: 0.0.40
codegen_flags: <defaults>
</compile_context>

<pallas_src>
import jax
import jax.numpy as jnp
import numpy as np
from jax import lax
from jax.experimental import pallas as pl
from jax.experimental.pallas import tpu as pltpu


def _make_kernel(Bt, H, W, Ni, Ne, Nse, No, F, S, P, identity):
    HW = H * W
    H2 = (H + 2 * P - F) // S + 1
    W2 = (W + 2 * P - F) // S + 1
    HW2 = H2 * W2
    L = Bt * HW            # lanes per grid step (batch tile folded onto lanes)
    L2 = Bt * HW2
    FF = F * F

    def kernel(x_ref, w1_ref, wf_ref, w3_ref, b3_ref, out_ref):
        x = x_ref[0]                                            # (Ni, L) f32

        # Packed f32 params: [w2 taps (s2 folded) | wse1 | wse2^T | b1 | b2]
        o = 0
        w2s = wf_ref[:, o:o + FF]; o += FF                      # (Ne, F*F)
        wse1 = wf_ref[:, o:o + Nse]; o += Nse                   # (Ne, Nse)
        wse2t = wf_ref[:, o:o + Nse]; o += Nse                  # (Ne, Nse)
        b1 = wf_ref[:, o:o + 1]; o += 1                         # (Ne, 1)
        b2 = wf_ref[:, o:o + 1]                                 # (Ne, 1)

        # ---- conv1 (1x1, BN1 scale folded) + bias + relu: weight-stationary MXU
        a1 = jnp.dot(w1_ref[...], x.astype(jnp.bfloat16),
                     preferred_element_type=jnp.float32)        # (Ne, L) f32
        a1 = jnp.maximum(a1 + b1, 0.0)

        # ---- conv2: depthwise FxF, stride S, zero-pad P ------------------------
        # Lane rolls (XLU) + static full-height boundary masks.  With Bt batch
        # blocks of HW lanes, any lane whose rolled source would cross a block
        # boundary is exactly a lane the h/w masks zero out.
        pos = lax.broadcasted_iota(jnp.int32, (Ne, L), 1)
        q = (pos & (HW - 1)) if HW & (HW - 1) == 0 else (pos % HW)   # idx in block
        ww = (q & (W - 1)) if W & (W - 1) == 0 else (q % W)          # column idx

        def h_mask(di):
            if di == P:
                return None
            if di < P:
                return q >= (P - di) * W
            return q < (H + P - di) * W

        def w_mask(dj):
            if dj == P:
                return None
            if dj < P:
                return ww >= (P - dj)
            return ww < (W + P - dj)

        hmasks = [h_mask(di) for di in range(F)]
        wmasks = [w_mask(dj) for dj in range(F)]

        acc = None
        for di in range(F):
            for dj in range(F):
                k = di * F + dj
                off = (di - P) * W + (dj - P)
                shifted = a1 if off == 0 else pltpu.roll(
                    a1, shift=(-off) % L, axis=1)
                contrib = shifted * w2s[:, k:k + 1]
                m = hmasks[di]
                if wmasks[dj] is not None:
                    m = wmasks[dj] if m is None else (m & wmasks[dj])
                if m is not None:
                    contrib = jnp.where(m, contrib, 0.0)
                acc = contrib if acc is None else acc + contrib

        if S > 1:
            # TODO(synk): fallback only -- needs a lane-dense, stride-aware
            #             rewrite (avoid strided lane slice / <128-lane output)
            #             before this path is used in production.
            acc = acc.reshape(Ne, Bt, H, W)
            acc = lax.slice(acc, (0, 0, 0, 0), (Ne, Bt, H, W), (1, 1, S, S))
            acc = acc.reshape(Ne, L2)
        a2 = jnp.maximum(acc + b2, 0.0)                          # (Ne, L2)

        # ---- SE: global mean -> lin1 -> relu -> lin2 -> sigmoid gate -----------
        if Bt == 1:
            pooled = jnp.mean(a2, axis=-1, keepdims=True)        # (Ne, 1)
            hid = jnp.maximum(jnp.sum(wse1 * pooled, axis=0), 0.0)        # (Nse,)
            g = jax.nn.sigmoid(
                jnp.sum(wse2t * hid[None, :], axis=-1, keepdims=True))    # (Ne, 1)
            a2g = a2 * g
        else:
            a2b = a2.reshape(Ne, Bt, HW2)
            pooled = jnp.mean(a2b, axis=-1)                              # (Ne, Bt)
            hid = jnp.maximum(
                jnp.sum(wse1[:, :, None] * pooled[:, None, :], axis=0), 0.0)
            g = jax.nn.sigmoid(
                jnp.sum(wse2t[:, :, None] * hid[None, :, :], axis=1))    # (Ne, Bt)
            a2g = (a2b * g[:, :, None]).reshape(Ne, L2)

        # ---- conv3 (1x1, BN3 scale folded) + bias (+ identity residual) --------
        y = jnp.dot(w3_ref[...], a2g.astype(jnp.bfloat16),
                    preferred_element_type=jnp.float32)          # (No, L2)
        y = y + b3_ref[...]
        if identity:
            y = y + x
        out_ref[0] = y

    return kernel, H2, W2


def inv_res_block(x, params, *, F, S, identity, batch_tile=1):
    """x: NCHW (B, Ni, H, W) f32 -> NCHW (B, No, H2, W2) f32 (inference-mode BN)."""
    assert F % 2 == 1, "odd filter sizes only (P = F // 2 'same'-style padding)"
    B, Ni, H, W = x.shape
    (w1, s1, b1, w2_flat, s2, b2, wse1, wse2, w3, s3, b3) = params
    Ne = w1.shape[1]
    No = w3.shape[1]
    Nse = wse1.shape[1]
    P = F // 2
    Bt = batch_tile
    assert B % Bt == 0
    G = B // Bt

    kernel, H2, W2 = _make_kernel(Bt, H, W, Ni, Ne, Nse, No, F, S, P, identity)
    HW, HW2 = H * W, H2 * W2
    L, L2 = Bt * HW, Bt * HW2

    # ---- wrapper-side parameter prep (plain XLA, once per weight set) ----------
    f32 = jnp.float32
    # BN scales folded into conv weights; fold in f32, then cast MXU operands bf16.
    w1k = (jnp.transpose(w1).astype(f32) * s1.reshape(Ne, 1)).astype(jnp.bfloat16)
    w3k = (jnp.transpose(w3).astype(f32) * s3.reshape(No, 1)).astype(jnp.bfloat16)
    w2k = jnp.transpose(w2_flat).astype(f32) * s2.reshape(Ne, 1)       # (Ne, F*F)
    wf = jnp.concatenate(
        [w2k, wse1.astype(f32), jnp.transpose(wse2).astype(f32),
         b1.reshape(Ne, 1).astype(f32), b2.reshape(Ne, 1).astype(f32)], axis=1)
    b3k = b3.reshape(No, 1).astype(f32)

    # Activations stay channels-first with spatial flattened on lanes: for NCHW
    # input this is a pure reshape (no transpose).  Bt > 1 additionally folds
    # the batch tile onto lanes.
    x_cf = x.reshape(B, Ni, HW)
    if Bt > 1:
        x_k = x_cf.reshape(G, Bt, Ni, HW).transpose(0, 2, 1, 3).reshape(G, Ni, L)
    else:
        x_k = x_cf

    weights = (w1k, wf, w3k, b3k)

    def full_spec(a):
        nd = a.ndim
        return pl.BlockSpec(a.shape, lambda g, _nd=nd: (0,) * _nd)

    in_specs = [pl.BlockSpec((1, Ni, L), lambda g: (g, 0, 0))]
    in_specs += [full_spec(a) for a in weights]
    out_spec = pl.BlockSpec((1, No, L2), lambda g: (g, 0, 0))

    out_cf = pl.pallas_call(
        kernel,
        out_shape=jax.ShapeDtypeStruct((G, No, L2), jnp.float32),
        grid_spec=pltpu.PrefetchScalarGridSpec(
            num_scalar_prefetch=0,
            grid=(G,),
            in_specs=in_specs,
            out_specs=out_spec,
        ),
        compiler_params=pltpu.CompilerParams(
            dimension_semantics=("parallel",),
            vmem_limit_bytes=32 * 1024 * 1024),
    )(x_k, *weights)

    if Bt > 1:
        out_cf = out_cf.reshape(G, No, Bt, HW2).transpose(0, 2, 1, 3)
    return out_cf.reshape(B, No, H2, W2)


def reference(x, w1, s1, b1, w2, s2, b2, wse1, wse2, w3, s3, b3,
              *, F, S, P, identity):
    """Pure-JAX NCHW reference (eval-mode BN folded into scale/bias)."""
    Ne = w1.shape[1]

    def bc(v):
        return v[None, :, None, None]

    a1 = jnp.einsum('bchw,ce->behw', x, w1)
    a1 = jnp.maximum(a1 * bc(s1) + bc(b1), 0.0)
    w2_hwio = w2[:, :, None, :]                                  # (F, F, 1, Ne)
    a2 = lax.conv_general_dilated(
        a1, w2_hwio, window_strides=(S, S), padding=((P, P), (P, P)),
        dimension_numbers=('NCHW', 'HWIO', 'NCHW'), feature_group_count=Ne)
    a2 = jnp.maximum(a2 * bc(s2) + bc(b2), 0.0)
    pooled = jnp.mean(a2, axis=(2, 3))                           # (B, Ne)
    g = jax.nn.sigmoid(jnp.maximum(pooled @ wse1, 0.0) @ wse2)   # (B, Ne)
    a2 = a2 * g[:, :, None, None]
    y = jnp.einsum('behw,eo->bohw', a2, w3)
    y = y * bc(s3) + bc(b3)
    if identity:
        y = y + x
    return y


if __name__ == "__main__":
    B, H, W = 2, 16, 16
    Ni, Ne, Nse, No, F, S = 16, 32, 8, 16, 3, 1
    identity = (Ni == No) and (S <= 1)        # matches PyTorch module condition
    P = F // 2
    eps = 1e-5

    keys = jax.random.split(jax.random.PRNGKey(0), 18)
    x = jax.random.normal(keys[0], (B, Ni, H, W), jnp.float32)     # NCHW (PyTorch)

    w1 = 0.1 * jax.random.normal(keys[1], (Ni, Ne), jnp.float32)   # conv1 (Cin,Cout)
    w2 = 0.1 * jax.random.normal(keys[2], (F, F, Ne), jnp.float32) # depthwise taps
    w3 = 0.1 * jax.random.normal(keys[3], (Ne, No), jnp.float32)   # conv3 (Cin,Cout)
    wse1 = 0.1 * jax.random.normal(keys[4], (Ne, Nse), jnp.float32)  # lin1^T
    wse2 = 0.1 * jax.random.normal(keys[5], (Nse, Ne), jnp.float32)  # lin2^T

    def bn_fold(kg, kb, km, kv, C):
        gamma = 1.0 + 0.1 * jax.random.normal(kg, (C,), jnp.float32)
        beta = 0.1 * jax.random.normal(kb, (C,), jnp.float32)
        mean = 0.1 * jax.random.normal(km, (C,), jnp.float32)
        var = jax.random.uniform(kv, (C,), jnp.float32, minval=0.5, maxval=1.5)
        scale = gamma / jnp.sqrt(var + eps)
        bias = beta - mean * scale
        return scale, bias

    s1, b1 = bn_fold(keys[6], keys[7], keys[8], keys[9], Ne)
    s2, b2 = bn_fold(keys[10], keys[11], keys[12], keys[13], Ne)
    s3, b3 = bn_fold(keys[14], keys[15], keys[16], keys[17], No)

    w2_flat = w2.reshape(F * F, Ne)
    params = (w1, s1, b1, w2_flat, s2, b2, wse1, wse2, w3, s3, b3)

    out = inv_res_block(x, params, F=F, S=S, identity=identity, batch_tile=1)
    out = jax.block_until_ready(out)

    ref = reference(x, w1, s1, b1, w2, s2, b2, wse1, wse2, w3, s3, b3,
                    F=F, S=S, P=P, identity=identity)
    # bf16 MXU operands with folded BN scales (f32 accumulation) vs pure-f32 ref.
    np.testing.assert_allclose(np.asarray(out), np.asarray(ref),
                               rtol=2e-2, atol=2e-2)
    print("KERNEL_OK")
</pallas_src>

<mosaic_0001>
module attributes {stable_mosaic.version = 11 : i64} {
  func.func @kernel(%arg0: i32, %arg1: memref<1x16x256xf32, #tpu.memory_space<vmem>>, %arg2: memref<32x16xbf16, #tpu.memory_space<vmem>>, %arg3: memref<32x27xf32, #tpu.memory_space<vmem>>, %arg4: memref<16x32xbf16, #tpu.memory_space<vmem>>, %arg5: memref<16x1xf32, #tpu.memory_space<vmem>>, %arg6: memref<1x16x256xf32, #tpu.memory_space<vmem>>) attributes {dimension_semantics = [#tpu.dimension_semantics<parallel>], iteration_bounds = array<i64: 2>, scalar_prefetch = 0 : i64, scratch_operands = 0 : i64, tpu.core_type = #tpu.core_type<tc>, window_params = [{transform_indices = @transform_0, window_bounds = array<i64: 1, 16, 256>}, {pipeline_mode = #tpu.pipeline_mode<synchronous>, transform_indices = @transform_1, window_bounds = array<i64: 32, 16>}, {pipeline_mode = #tpu.pipeline_mode<synchronous>, transform_indices = @transform_2, window_bounds = array<i64: 32, 27>}, {pipeline_mode = #tpu.pipeline_mode<synchronous>, transform_indices = @transform_3, window_bounds = array<i64: 16, 32>}, {pipeline_mode = #tpu.pipeline_mode<synchronous>, transform_indices = @transform_4, window_bounds = array<i64: 16, 1>}, {transform_indices = @transform_5, window_bounds = array<i64: 1, 16, 256>}]} {
    %c0 = arith.constant 0 : index
    %c0_0 = arith.constant 0 : index
    %c0_1 = arith.constant 0 : index
    %0 = vector.load %arg1[%c0, %c0_0, %c0_1] : memref<1x16x256xf32, #tpu.memory_space<vmem>>, vector<1x16x256xf32>
    %1 = vector.shape_cast %0 : vector<1x16x256xf32> to vector<16x256xf32>
    %c0_2 = arith.constant 0 : index
    %c0_3 = arith.constant 0 : index
    %2 = vector.load %arg3[%c0_2, %c0_3] : memref<32x27xf32, #tpu.memory_space<vmem>>, vector<32x9xf32>
    %c0_4 = arith.constant 0 : index
    %c9 = arith.constant 9 : index
    %3 = vector.load %arg3[%c0_4, %c9] : memref<32x27xf32, #tpu.memory_space<vmem>>, vector<32x8xf32>
    %c0_5 = arith.constant 0 : index
    %c17 = arith.constant 17 : index
    %4 = vector.load %arg3[%c0_5, %c17] : memref<32x27xf32, #tpu.memory_space<vmem>>, vector<32x8xf32>
    %c0_6 = arith.constant 0 : index
    %c25 = arith.constant 25 : index
    %5 = vector.load %arg3[%c0_6, %c25] : memref<32x27xf32, #tpu.memory_space<vmem>>, vector<32x1xf32>
    %c0_7 = arith.constant 0 : index
    %c26 = arith.constant 26 : index
    %6 = vector.load %arg3[%c0_7, %c26] : memref<32x27xf32, #tpu.memory_space<vmem>>, vector<32x1xf32>
    %c0_8 = arith.constant 0 : index
    %c0_9 = arith.constant 0 : index
    %7 = vector.load %arg2[%c0_8, %c0_9] : memref<32x16xbf16, #tpu.memory_space<vmem>>, vector<32x16xbf16>
    %8 = arith.truncf %1 : vector<16x256xf32> to vector<16x256xbf16>
    %cst = arith.constant dense<0.000000e+00> : vector<32x256xf32>
    %9 = tpu.matmul %7, %8, %cst {dimension_numbers = #tpu.dot_dimension_numbers<[1], [0], [0], [1], [0, 0, 1, 1], [], []>} : vector<32x16xbf16>, vector<16x256xbf16>, vector<32x256xf32> -> vector<32x256xf32>
    %10 = vector.broadcast %5 : vector<32x1xf32> to vector<32x256xf32>
    %11 = arith.addf %9, %10 : vector<32x256xf32>
    %cst_10 = arith.constant 0.000000e+00 : f32
    %12 = vector.broadcast %cst_10 : f32 to vector<32x256xf32>
    %13 = arith.maximumf %11, %12 : vector<32x256xf32>
    %14 = tpu.iota {dimensions = array<i32: 1>} : vector<32x256xi32>
    %c255_i32 = arith.constant 255 : i32
    %15 = vector.broadcast %c255_i32 : i32 to vector<32x256xi32>
    %16 = arith.andi %14, %15 : vector<32x256xi32>
    %c15_i32 = arith.constant 15 : i32
    %17 = vector.broadcast %c15_i32 : i32 to vector<32x256xi32>
    %18 = arith.andi %16, %17 : vector<32x256xi32>
    %c16_i32 = arith.constant 16 : i32
    %19 = vector.broadcast %c16_i32 : i32 to vector<32x256xi32>
    %20 = arith.cmpi sge, %16, %19 : vector<32x256xi32>
    %c240_i32 = arith.constant 240 : i32
    %21 = vector.broadcast %c240_i32 : i32 to vector<32x256xi32>
    %22 = arith.cmpi slt, %16, %21 : vector<32x256xi32>
    %c1_i32 = arith.constant 1 : i32
    %23 = vector.broadcast %c1_i32 : i32 to vector<32x256xi32>
    %24 = arith.cmpi sge, %18, %23 : vector<32x256xi32>
    %c15_i32_11 = arith.constant 15 : i32
    %25 = vector.broadcast %c15_i32_11 : i32 to vector<32x256xi32>
    %26 = arith.cmpi slt, %18, %25 : vector<32x256xi32>
    %c17_i32 = arith.constant 17 : i32
    %27 = tpu.dynamic_rotate %13 by %c17_i32 dim 1 : vector<32x256xf32>, i32 -> vector<32x256xf32>
    %28 = vector.extract_strided_slice %2 {offsets = [0, 0], sizes = [32, 1], strides = [1, 1]} : vector<32x9xf32> to vector<32x1xf32>
    %29 = vector.broadcast %28 : vector<32x1xf32> to vector<32x256xf32>
    %30 = arith.mulf %27, %29 : vector<32x256xf32>
    %31 = arith.andi %20, %24 : vector<32x256xi1>
    %cst_12 = arith.constant 0.000000e+00 : f32
    %32 = vector.broadcast %cst_12 : f32 to vector<32x256xf32>
    %33 = arith.select %31, %30, %32 : vector<32x256xi1>, vector<32x256xf32>
    %c16_i32_13 = arith.constant 16 : i32
    %34 = tpu.dynamic_rotate %13 by %c16_i32_13 dim 1 : vector<32x256xf32>, i32 -> vector<32x256xf32>
    %35 = vector.extract_strided_slice %2 {offsets = [0, 1], sizes = [32, 1], strides = [1, 1]} : vector<32x9xf32> to vector<32x1xf32>
    %36 = vector.broadcast %35 : vector<32x1xf32> to vector<32x256xf32>
    %37 = arith.mulf %34, %36 : vector<32x256xf32>
    %cst_14 = arith.constant 0.000000e+00 : f32
    %38 = vector.broadcast %cst_14 : f32 to vector<32x256xf32>
    %39 = arith.select %20, %37, %38 : vector<32x256xi1>, vector<32x256xf32>
    %40 = arith.addf %33, %39 : vector<32x256xf32>
    %c15_i32_15 = arith.constant 15 : i32
    %41 = tpu.dynamic_rotate %13 by %c15_i32_15 dim 1 : vector<32x256xf32>, i32 -> vector<32x256xf32>
    %42 = vector.extract_strided_slice %2 {offsets = [0, 2], sizes = [32, 1], strides = [1, 1]} : vector<32x9xf32> to vector<32x1xf32>
    %43 = vector.broadcast %42 : vector<32x1xf32> to vector<32x256xf32>
    %44 = arith.mulf %41, %43 : vector<32x256xf32>
    %45 = arith.andi %20, %26 : vector<32x256xi1>
    %cst_16 = arith.constant 0.000000e+00 : f32
    %46 = vector.broadcast %cst_16 : f32 to vector<32x256xf32>
    %47 = arith.select %45, %44, %46 : vector<32x256xi1>, vector<32x256xf32>
    %48 = arith.addf %40, %47 : vector<32x256xf32>
    %c1_i32_17 = arith.constant 1 : i32
    %49 = tpu.dynamic_rotate %13 by %c1_i32_17 dim 1 : vector<32x256xf32>, i32 -> vector<32x256xf32>
    %50 = vector.extract_strided_slice %2 {offsets = [0, 3], sizes = [32, 1], strides = [1, 1]} : vector<32x9xf32> to vector<32x1xf32>
    %51 = vector.broadcast %50 : vector<32x1xf32> to vector<32x256xf32>
    %52 = arith.mulf %49, %51 : vector<32x256xf32>
    %cst_18 = arith.constant 0.000000e+00 : f32
    %53 = vector.broadcast %cst_18 : f32 to vector<32x256xf32>
    %54 = arith.select %24, %52, %53 : vector<32x256xi1>, vector<32x256xf32>
    %55 = arith.addf %48, %54 : vector<32x256xf32>
    %56 = vector.extract_strided_slice %2 {offsets = [0, 4], sizes = [32, 1], strides = [1, 1]} : vector<32x9xf32> to vector<32x1xf32>
    %57 = vector.broadcast %56 : vector<32x1xf32> to vector<32x256xf32>
    %58 = arith.mulf %13, %57 : vector<32x256xf32>
    %59 = arith.addf %55, %58 : vector<32x256xf32>
    %c255_i32_19 = arith.constant 255 : i32
    %60 = tpu.dynamic_rotate %13 by %c255_i32_19 dim 1 : vector<32x256xf32>, i32 -> vector<32x256xf32>
    %61 = vector.extract_strided_slice %2 {offsets = [0, 5], sizes = [32, 1], strides = [1, 1]} : vector<32x9xf32> to vector<32x1xf32>
    %62 = vector.broadcast %61 : vector<32x1xf32> to vector<32x256xf32>
    %63 = arith.mulf %60, %62 : vector<32x256xf32>
    %cst_20 = arith.constant 0.000000e+00 : f32
    %64 = vector.broadcast %cst_20 : f32 to vector<32x256xf32>
    %65 = arith.select %26, %63, %64 : vector<32x256xi1>, vector<32x256xf32>
    %66 = arith.addf %59, %65 : vector<32x256xf32>
    %c241_i32 = arith.constant 241 : i32
    %67 = tpu.dynamic_rotate %13 by %c241_i32 dim 1 : vector<32x256xf32>, i32 -> vector<32x256xf32>
    %68 = vector.extract_strided_slice %2 {offsets = [0, 6], sizes = [32, 1], strides = [1, 1]} : vector<32x9xf32> to vector<32x1xf32>
    %69 = vector.broadcast %68 : vector<32x1xf32> to vector<32x256xf32>
    %70 = arith.mulf %67, %69 : vector<32x256xf32>
    %71 = arith.andi %22, %24 : vector<32x256xi1>
    %cst_21 = arith.constant 0.000000e+00 : f32
    %72 = vector.broadcast %cst_21 : f32 to vector<32x256xf32>
    %73 = arith.select %71, %70, %72 : vector<32x256xi1>, vector<32x256xf32>
    %74 = arith.addf %66, %73 : vector<32x256xf32>
    %c240_i32_22 = arith.constant 240 : i32
    %75 = tpu.dynamic_rotate %13 by %c240_i32_22 dim 1 : vector<32x256xf32>, i32 -> vector<32x256xf32>
    %76 = vector.extract_strided_slice %2 {offsets = [0, 7], sizes = [32, 1], strides = [1, 1]} : vector<32x9xf32> to vector<32x1xf32>
    %77 = vector.broadcast %76 : vector<32x1xf32> to vector<32x256xf32>
    %78 = arith.mulf %75, %77 : vector<32x256xf32>
    %cst_23 = arith.constant 0.000000e+00 : f32
    %79 = vector.broadcast %cst_23 : f32 to vector<32x256xf32>
    %80 = arith.select %22, %78, %79 : vector<32x256xi1>, vector<32x256xf32>
    %81 = arith.addf %74, %80 : vector<32x256xf32>
    %c239_i32 = arith.constant 239 : i32
    %82 = tpu.dynamic_rotate %13 by %c239_i32 dim 1 : vector<32x256xf32>, i32 -> vector<32x256xf32>
    %83 = vector.extract_strided_slice %2 {offsets = [0, 8], sizes = [32, 1], strides = [1, 1]} : vector<32x9xf32> to vector<32x1xf32>
    %84 = vector.broadcast %83 : vector<32x1xf32> to vector<32x256xf32>
    %85 = arith.mulf %82, %84 : vector<32x256xf32>
    %86 = arith.andi %22, %26 : vector<32x256xi1>
    %cst_24 = arith.constant 0.000000e+00 : f32
    %87 = vector.broadcast %cst_24 : f32 to vector<32x256xf32>
    %88 = arith.select %86, %85, %87 : vector<32x256xi1>, vector<32x256xf32>
    %89 = arith.addf %81, %88 : vector<32x256xf32>
    %90 = vector.broadcast %6 : vector<32x1xf32> to vector<32x256xf32>
    %91 = arith.addf %89, %90 : vector<32x256xf32>
    %cst_25 = arith.constant 0.000000e+00 : f32
    %92 = vector.broadcast %cst_25 : f32 to vector<32x256xf32>
    %93 = arith.maximumf %91, %92 : vector<32x256xf32>
    %cst_26 = arith.constant dense<0.000000e+00> : vector<32xf32>
    %94 = vector.multi_reduction <add>, %93, %cst_26 [1] : vector<32x256xf32> to vector<32xf32>
    %95 = vector.shape_cast %94 : vector<32xf32> to vector<32x1xf32>
    %cst_27 = arith.constant 2.560000e+02 : f32
    %96 = vector.broadcast %cst_27 : f32 to vector<32x1xf32>
    %97 = arith.divf %95, %96 : vector<32x1xf32>
    %98 = vector.broadcast %97 : vector<32x1xf32> to vector<32x8xf32>
    %99 = arith.mulf %3, %98 : vector<32x8xf32>
    %cst_28 = arith.constant dense<0.000000e+00> : vector<8xf32>
    %100 = vector.multi_reduction <add>, %99, %cst_28 [0] : vector<32x8xf32> to vector<8xf32>
    %cst_29 = arith.constant 0.000000e+00 : f32
    %101 = vector.broadcast %cst_29 : f32 to vector<8xf32>
    %102 = arith.maximumf %100, %101 : vector<8xf32>
    %103 = vector.shape_cast %102 : vector<8xf32> to vector<1x8xf32>
    %104 = vector.broadcast %103 : vector<1x8xf32> to vector<32x8xf32>
    %105 = arith.mulf %4, %104 : vector<32x8xf32>
    %cst_30 = arith.constant dense<0.000000e+00> : vector<32xf32>
    %106 = vector.multi_reduction <add>, %105, %cst_30 [1] : vector<32x8xf32> to vector<32xf32>
    %107 = vector.shape_cast %106 : vector<32xf32> to vector<32x1xf32>
    %108 = arith.negf %107 : vector<32x1xf32>
    %109 = math.exp %108 : vector<32x1xf32>
    %cst_31 = arith.constant 1.000000e+00 : f32
    %110 = vector.broadcast %cst_31 : f32 to vector<32x1xf32>
    %111 = arith.addf %110, %109 : vector<32x1xf32>
    %112 = arith.divf %110, %111 : vector<32x1xf32>
    %113 = vector.broadcast %112 : vector<32x1xf32> to vector<32x256xf32>
    %114 = arith.mulf %93, %113 : vector<32x256xf32>
    %c0_32 = arith.constant 0 : index
    %c0_33 = arith.constant 0 : index
    %115 = vector.load %arg4[%c0_32, %c0_33] : memref<16x32xbf16, #tpu.memory_space<vmem>>, vector<16x32xbf16>
    %116 = arith.truncf %114 : vector<32x256xf32> to vector<32x256xbf16>
    %cst_34 = arith.constant dense<0.000000e+00> : vector<16x256xf32>
    %117 = tpu.matmul %115, %116, %cst_34 {dimension_numbers = #tpu.dot_dimension_numbers<[1], [0], [0], [1], [0, 0, 1, 1], [], []>} : vector<16x32xbf16>, vector<32x256xbf16>, vector<16x256xf32> -> vector<16x256xf32>
    %c0_35 = arith.constant 0 : index
    %c0_36 = arith.constant 0 : index
    %118 = vector.load %arg5[%c0_35, %c0_36] : memref<16x1xf32, #tpu.memory_space<vmem>>, vector<16x1xf32>
    %119 = vector.broadcast %118 : vector<16x1xf32> to vector<16x256xf32>
    %120 = arith.addf %117, %119 : vector<16x256xf32>
    %121 = arith.addf %120, %1 : vector<16x256xf32>
    %c0_37 = arith.constant 0 : index
    %c0_38 = arith.constant 0 : index
    %c0_39 = arith.constant 0 : index
    %122 = vector.load %arg6[%c0_37, %c0_38, %c0_39] : memref<1x16x256xf32, #tpu.memory_space<vmem>>, vector<1x16x256xf32>
    %123 = vector.shape_cast %122 : vector<1x16x256xf32> to vector<16x256xf32>
    %124 = vector.shape_cast %121 : vector<16x256xf32> to vector<1x16x256xf32>
    tpu.vector_store %arg6[%c0_37, %c0_38, %c0_39], %124 {strides = array<i32>} : memref<1x16x256xf32, #tpu.memory_space<vmem>>, vector<1x16x256xf32>,
    return
  }
  func.func @transform_0(%arg0: i32) -> (i32, i32, i32) {
    %c0_i32 = arith.constant 0 : i32
    %c0_i32_0 = arith.constant 0 : i32
    %c0_i32_1 = arith.constant 0 : i32
    return %arg0, %c0_i32, %c0_i32_0 : i32, i32, i32
  }
  func.func @transform_1(%arg0: i32) -> (i32, i32) {
    %c0_i32 = arith.constant 0 : i32
    %c0_i32_0 = arith.constant 0 : i32
    %c0_i32_1 = arith.constant 0 : i32
    return %c0_i32, %c0_i32_0 : i32, i32
  }
  func.func @transform_2(%arg0: i32) -> (i32, i32) {
    %c0_i32 = arith.constant 0 : i32
    %c0_i32_0 = arith.constant 0 : i32
    %c0_i32_1 = arith.constant 0 : i32
    return %c0_i32, %c0_i32_0 : i32, i32
  }
  func.func @transform_3(%arg0: i32) -> (i32, i32) {
    %c0_i32 = arith.constant 0 : i32
    %c0_i32_0 = arith.constant 0 : i32
    %c0_i32_1 = arith.constant 0 : i32
    return %c0_i32, %c0_i32_0 : i32, i32
  }
  func.func @transform_4(%arg0: i32) -> (i32, i32) {
    %c0_i32 = arith.constant 0 : i32
    %c0_i32_0 = arith.constant 0 : i32
    %c0_i32_1 = arith.constant 0 : i32
    return %c0_i32, %c0_i32_0 : i32, i32
  }
  func.func @transform_5(%arg0: i32) -> (i32, i32, i32) {
    %c0_i32 = arith.constant 0 : i32
    %c0_i32_0 = arith.constant 0 : i32
    %c0_i32_1 = arith.constant 0 : i32
    return %arg0, %c0_i32, %c0_i32_0 : i32, i32, i32
  }
}

</mosaic_0001>

<bundles_post_ra>
// kernel: tpu_custom_call.1
= control target key start
LH: loop header
LB: loop body
LE: loop exit
PB: predicated region body
PF: predicated region fallthrough
CT: control target
= control target key end

     0   :  { %10 = vsyncpa [#allocation3], 0  ;;  %s2493_s0 = inlined_call_operand.hbm [shape: f32[2,16,256], index: 0, kind: input, shape index: {}]   ;;  %s2494_s1 = inlined_call_operand.vmem [shape: bf16[32,16], index: 1, kind: input, shape index: {}]   ;;  %s2495_s2 = inlined_call_operand.vmem [shape: f32[32,27], index: 2, kind: input, shape index: {}]   ;;  %s2496_s3 = inlined_call_operand.vmem [shape: bf16[16,32], index: 3, kind: input, shape index: {}]   ;;  %s2497_s4 = inlined_call_operand.vmem [shape: f32[16,1], index: 4, kind: input, shape index: {}]   ;;  %s2498_s5 = inlined_call_operand.hbm [shape: f32[2,16,256], index: 5, kind: output, shape index: {}]  }
   0x1   :  { %12 = vsyncpa [#allocation3 + $0x1], 0 }
   0x2   :  { %13 = vsyncpa [#allocation4], 0 }
   0x3   :  { %15 = vsyncpa [#allocation4 + $0x1], 0  ;;  %s1581_s18 = smov 0   ;;  %s1583_s19 = smov 0  }
   0x4   :  { %s1585_s20 = smov 0   ;;  %s1587_s21 = smov 0  }
   0x5 LB: > { %s1602_s22 = sadd.s32 4294967295, %s1525_s21   ;;  %s1257_s23 = sadd.s32 4294967294, %s1525_s21   ;;  %s1525_s21 = sphi %s1587_s21, %s2520_s21   ;;  %s1521_s20 = sphi %s1585_s20, %s2519_s20   ;;  %s1517_s19 = sphi %s1583_s19, %s2518_s19   ;;  %s1513_s18 = sphi %s1581_s18, %s2517_s18  }
   0x6   : > { %s1606_s24 = sadd.s32 1, %s1525_s21   ;;  %s28_s25 = sadd.s32 1, %s1521_s20 }
   0x7   : > { %s25_s26 = ssub.s32 %s1525_s21, %s1606_s24  ;;  %p35_p0 = scmp.ne.s32.totalorder %s1521_s20, %s1517_s19 }
   0x8   : > { %p26_p1 = scmp.eq.s32.totalorder %s25_s26, 0  ;;  %p36_p2 = scmp.eq.s32.totalorder %s1525_s21, 0 }
   0x9   : > { %p41_p3 = scmp.ne.s32.totalorder %s1517_s19, %s1513_s18  ;;  %p42_p4 = scmp.eq.s32.totalorder %s1602_s22, 0 }
   0xa   : > { %s1618_s27 = scalar_select %p26_p1, %s1521_s20, %s28_s25  }
   0xb   : > { %p1620_p5 = por %p36_p2, %p35_p0  ;;  %p1624_p6 = por %p42_p4, %p41_p3 }
   0xc   : > { %p149_p7 = scmp.eq.s32.totalorder %s1602_s22, 1  ;;  %p155_p8 = scmp.eq.s32.totalorder %s1257_s23, 1 }
   0xd   : > { %p1310_p10 = scmp.lt.s32.totalorder %s1525_s21, 2  ;;  %s187_s7 = sand.u32 1, %s1521_s20  }
   0xe   : > { %p1631_p11 = por %p149_p7, %p35_p0  ;;  %p1635_p12 = por %p155_p8, %p41_p3 }
   0xf   : > { %s1293_s8 = sshll.u32 %s1525_s21, 5  ;;  %s1260_s9 = sshll.u32 %s187_s7, 5 }
  0x10   : > { %s196_s12 = scalar_lea.hbm %s2493_s0, %s1293_s8  ;;  %s191_s14 = scalar_lea.vmem [#allocation2], %s1260_s9 }
  0x11   : > { %s197_s13 = sshll.u32 %s196_s12, 4  ;;  %s199_s15 = sshll.u32 %s191_s14, 4  ;;  %s198_s13 = int_to_ptr.hbm [resolvable:$true] %s197_s13  ;;  %s200_s15 = int_to_ptr.vmem [resolvable:$true] %s199_s15 }
  0x12   : > { %p1646_p13 = pnand %p1310_p10, %p1620_p5  ;;  %p1263_p0 = scmp.ge.s32.totalorder %s1525_s21, 1 }
  0x13   : > { %p207_p1 = scmp.lt.s32.totalorder %s1525_s21, 3  ;;  %s188_s17 = scalar_lea.sflag [#allocation3], %s187_s7 }
  0x14   : > { %s1429_s23 = sshra.s32 %s198_s13, 4  ;;  %p1433_p3 = pneg %p1646_p13  ;;  %s1430_s23 = int_to_ptr.hbm [resolvable:$true] %s1429_s23 }
  0x15   : > { %s1431_s25 = scalar_lea.hbm %s1430_s23, 32  ;;  %s1436_s28 = scalar_lea.hbm %s2493_s0, 64 }
  0x16   : > { %p1432_p2 = scmp.ne.s32.totalorder %s1430_s23, %s1431_s25  ;;  %p1437_p5 = scmp.lt.s32.totalorder %s1430_s23, %s2493_s0 }
  0x17   : > { %p1438_p8 = scmp.lt.s32.totalorder %s1436_s28, %s1431_s25 }
  0x18   : > { %p1434_p4 = pnand %p1433_p3, %p1432_p2 }
  0x19   : > { %p1439_p10 = por %p1438_p8, %p1437_p5 }
  0x1a   : > { %p1435_p7 = pneg %p1434_p4 }
  0x1c   : > { %p1440_p9 = pnand %p1439_p10, %p1435_p7 }
  0x1e   : > { %1443 = shalt.err (!%p1440_p9)
}
  0x1f   : > { %s1527_s7 = smov 256   ;;  %s1528_s11 = smov 16  }
  0x20   : > { %1305 = dma.hbm_to_vmem [thread:$0]  (!%p1646_p13), %s198_s13, 512, %s200_s15, %s188_s17, %s1527_s7, %s1527_s7, %s1528_s11  }
  0x21   : > { %p208_p2 = pnand %p1263_p0, %p207_p1 }
  0x22   : > { %s1667_s12 = sand.u32 (!%p208_p2), 1, %s1517_s19  }
  0x23   : > { %211 = sbr.rel (%p208_p2) target bundleno = 1198 (0x4ae), region = 40  ;;  %s1264_s14 = sshll.u32 (!%p208_p2), %s1667_s12, 5 }
  0x24   : > { %s214_s23 = scalar_lea.sflag (!%p208_p2), [#allocation3], %s1667_s12  ;;  %s1673_s25 = scalar_lea.vmem (!%p208_p2), [#allocation2], %s1264_s14 }
  0x28   : > { %1504 = dma.done.wait (%p1624_p6), %s214_s23, 512  }
  0x29   : > { %1506 = vsyncadd (%p1624_p6), %s214_s23, 4294966784  ;;  %v1529_v0 = vmov 0   ;;  %v1530_v1 = vmov 25   ;;  %v1683_v2 = vld [vmem:[%s2495_s2 + $0x10] sm:$0xff]  ;;  %v1688_v3 = vld [vmem:[%s2495_s2] sm:$0xff]  ;;  %vm290_vm0 = vcmask 130048   ;;  %v343_v61 = vlaneseq }
  0x2a   : > { %1372 = vset.pattern.permute.xlu2 %v1529_v0  ;;  %1368 = vset.pattern.permute.xlu0 %v1530_v1  ;;  %v246_v4 = vld [vmem:[%s1673_s25] sm:$0xff]  ;;  %v248_v5 = vld [vmem:[%s1673_s25 + $0x10] sm:$0xff]  ;;  %v247_v6 = vld [vmem:[%s1673_s25 + $0x8] sm:$0xff]  ;;  %v1531_v12 = vmov 1   ;;  %v1532_v14 = vmov 2   ;;  %v1533_v16 = vmov 3  }
  0x2b   : > { %1369 = vset.pattern.permute.xlu1 %v1530_v1  ;;  %392 = vperm.xlu2 %1372, %v1683_v2   ;;  %v249_v7 = vld [vmem:[%s1673_s25 + $0x18] sm:$0xff]  ;;  %v258_v8 = vpack.c.bf16 %v248_v5, %v246_v4  ;;  %v1294_v10 = vld [vmem:[%s2494_s1] sm:$0xff]  ;;  %v1703_v11 = vld [vmem:[%s2495_s2 + $0x8] sm:$0xff]  ;;  %v1534_v17 = vmov 4   ;;  %s1535_s23 = smov 16   ;;  %s1536_s13 = smov 1  }
  0x2c   : > { %262 = vperm.xlu0 %1368, %v1688_v3   ;;  %v259_v9 = vpack.c.bf16 %v249_v7, %v247_v6  ;;  %272 = vperm.xlu1 %1369, %v1683_v2   ;;  %v1711_v13 = vld [vmem:[%s2495_s2 + $0x18] sm:$0xff]  ;;  %v1295_v15 = vld [vmem:[%s2494_s1 + $0x8] sm:$0xff]  ;;  %s1537_s15 = smov 17   ;;  %s1538_s16 = smov 127   ;;  %v1540_v43 = vmov 5   ;;  %v1851_v63 = vand.u32 127, %v343_v61 }
  0x2d   : > { %304 = vmatpush.bf16.msra.mxu0 %v258_v8  ;;  %s1539_s17 = smov 15   ;;  %v1541_v4 = vmov 6   ;;  %s1542_s29 = smov 113  }
  0x2e   : > { %323 = vmatpush.bf16.msra.mxu1 %v259_v9  ;;  %vm374_vm1 = vcmp.lt.s32.totalorder %v1851_v63, 17  ;;  %v1869_v8 = vadd.s32 128, %v1851_v63  ;;  %v346_v9 = vand.u32 255, %v1851_v63  ;;  %vm433_vm4 = vcmp.lt.s32.totalorder %v1851_v63, 16  ;;  %s1543_s26 = smov 112   ;;  %s1546_s8 = smov 111  }
  0x2f   : > { %vm498_vm8 = vcmp.lt.s32.totalorder %v1851_v63, 15  ;;  %vm662_vm11 = vcmp.lt.s32.totalorder %v1851_v63, 127  ;;  %vm565_vm12 = vcmp.lt.s32.totalorder %v1851_v63, 1  ;;  %vm727_vm13 = vcmp.lt.s32.totalorder %v1851_v63, 113  ;;  %s1297_s7 = sshll.u32 %s1602_s22, 5  ;;  %s244_s11 = scalar_lea.vmem [#allocation5], %s1264_s14 }
  0x30   : > { %1274 = vmatmul.msk.bf16.vlgmr.msra.gmra.mxu0 %vm290_vm0, %v1294_v10  ;;  %vm1887_vm2 = vcmp.ge.s32.totalorder %v346_v9, 16  ;;  %s1169_s22 = scalar_lea.sflag [#allocation4], %s1667_s12  ;;  %s1479_s9 = scalar_lea.hbm %s2498_s5, 64 }
  0x31   : > { %1276 = vmatmul.msk.bf16.vlgmr.msra.gmra.mxu1 %vm290_vm0, %v1294_v10 }
  0x33   : > { %1374 = vset.pattern.permute.xlu2 %v1531_v12 }
  0x34   : > { %267 = vperm.xlu0 %1368, %v1703_v11   ;;  %447 = vperm.xlu2 %1374, %v1703_v11  }
  0x35   : > { %277 = vperm.xlu1 %1369, %v1711_v13  }
  0x3c   : > { %1370 = vset.pattern.permute.xlu0 %v1529_v0  ;;  %1375 = vset.pattern.permute.xlu2 %v1532_v14 }
  0x3d   : > { %384 = vperm.xlu0 %1370, %v1688_v3   ;;  %508 = vperm.xlu2 %1375, %v1688_v3  }
  0x3e   : > { %1371 = vset.pattern.permute.xlu1 %v1529_v0 }
  0x3f   : > { %388 = vperm.xlu1 %1371, %v1703_v11  }
  0x40   : > { %1275 = vmatmul.msk.bf16.gmra.mxu0 %vm290_vm0, %v1295_v15 }
  0x41   : > { %1277 = vmatmul.msk.bf16.gmra.mxu1 %vm290_vm0, %v1295_v15  ;;  %vm794_vm0 = vcmp.lt.s32.totalorder %v1851_v63, 112 }
  0x45   : > { %1376 = vset.pattern.permute.xlu0 %v1532_v14  ;;  %1377 = vset.pattern.permute.xlu2 %v1531_v12 }
  0x46   : > { %512 = vperm.xlu0 %1376, %v1703_v11   ;;  %455 = vperm.xlu2 %1377, %v1711_v13  }
  0x47   : > { %396 = vperm.xlu1 %1371, %v1711_v13  }
  0x4e   : > { %516 = vperm.xlu0 %1376, %v1683_v2   ;;  %1379 = vset.pattern.permute.xlu2 %v1533_v16 }
  0x4f   : > { %1373 = vset.pattern.permute.xlu1 %v1531_v12  ;;  %579 = vperm.xlu2 %1379, %v1703_v11  }
  0x50   : > { %443 = vperm.xlu1 %1373, %v1688_v3  }
  0x56   : > { %1382 = vset.pattern.permute.xlu0 %v1534_v17 }
  0x57   : > { %619 = vperm.xlu0 %1382, %v1703_v11   ;;  %583 = vperm.xlu2 %1379, %v1683_v2  }
  0x58   : > { %451 = vperm.xlu1 %1373, %v1683_v2  }
  0x5f   : > { %1383 = vset.pattern.permute.xlu0 %v1533_v16  ;;  %1381 = vset.pattern.permute.xlu2 %v1534_v17 }
  0x60   : > { %1378 = vset.pattern.permute.xlu1 %v1533_v16  ;;  %615 = vperm.xlu2 %1381, %v1688_v3   ;;  %v1881_v16 = vand.u32 15, %v346_v9 }
  0x61   : > { %575 = vperm.xlu1 %1378, %v1688_v3  }
  0x62   : > { %vm354_vm3 = vcmp.ge.s32.totalorder %v1881_v16, 1  ;;  %vm356_vm7 = vcmp.lt.s32.totalorder %v1881_v16, 15 }
  0x63   : > { %vm1904_vm6 = vmand %vm1887_vm2, %vm354_vm3 }
  0x64   : > { %vm1932_vm10 = vmand %vm1887_vm2, %vm356_vm7 }
  0x68   : > { %1385 = vset.pattern.permute.xlu2 %v1540_v43 }
  0x69   : > { %1380 = vset.pattern.permute.xlu1 %v1532_v14  ;;  %v347_v14 = vand.u32 255, %v1869_v8 }
  0x6a   : > { %520 = vperm.xlu1 %1380, %v1711_v13  }
  0x6b   : > { %vm2208_vm14 = vcmp.lt.s32.totalorder %v347_v14, 240 }
  0x72   : > { %1384 = vset.pattern.permute.xlu1 %v1540_v43 }
  0x85   : > { %v1763_v29 = vpop.permute.xlu2 %392 }
  0x8e   : > { %v1777_v33 = vpop.permute.xlu2 %447 }
  0x97   : > { %v1787_v39 = vpop.permute.xlu2 %508 }
  0x9e   : > { %v263_v18 = vpop.permute.xlu0 %262  ;;  %v273_v34 = vpop.permute.xlu1 %272 }
  0xa0   : > { %v1801_v44 = vpop.permute.xlu2 %455 }
  0xa6   : > { %v268_v26 = vpop.permute.xlu0 %267 }
  0xa7   : > { %v278_v42 = vpop.permute.xlu1 %277 }
  0xa9   : > { %v1813_v49 = vpop.permute.xlu2 %579 }
  0xad   : > { %v306_v19 = vpop.f32.mrf.mxu0 }
  0xae   : > { %v325_v20 = vpop.f32.mrf.mxu1  ;;  %v307_v21 = vadd.f32 %v306_v19, %v263_v18 }
  0xaf   : > { %v326_v22 = vadd.f32 %v325_v20, %v263_v18  ;;  %v385_v55 = vpop.permute.xlu0 %384  ;;  %v1885_v18 = vand.u32 15, %v347_v14 }
  0xb0   : > { %v1739_v23 = vmax.f32 %v307_v21, 0.0 }
  0xb1   : > { %v1741_v24 = vmax.f32 %v326_v22, 0.0  ;;  %v1803_v46 = vpop.permute.xlu1 %388  ;;  %v1829_v54 = vpop.permute.xlu2 %583  ;;  %vm355_vm5 = vcmp.ge.s32.totalorder %v1885_v18, 1  ;;  %vm357_vm9 = vcmp.lt.s32.totalorder %v1885_v18, 15 }
  0xb2   : > { %549 = vrot.lane.b32.xlu1 %v1739_v23, %s1536_s13  ;;  %358 = vrot.lane.b32.xlu2 %v1739_v23, %s1537_s15  ;;  %vm2223_vm15 = vmand %vm2208_vm14, %vm355_vm5 }
  0xb3   : > { %425 = vrot.lane.b32.xlu0 %v1741_v24, %s1535_s23 }
  0xb5   : > { %v308_v30 = vpop.f32.mrf.mxu0 }
  0xb6   : > { %v327_v25 = vpop.f32.mrf.mxu1  ;;  %v309_v31 = vadd.f32 %v308_v30, %v268_v26 }
  0xb7   : > { %v328_v27 = vadd.f32 %v327_v25, %v268_v26 }
  0xb8   : > { %v1771_v32 = vmax.f32 %v309_v31, 0.0  ;;  %v1841_v58 = vpop.permute.xlu0 %512 }
  0xb9   : > { %v1761_v28 = vmax.f32 %v328_v27, 0.0  ;;  %v1821_v52 = vpop.permute.xlu1 %396 }
  0xba   : > { %646 = vrot.lane.b32.xlu1 %v1739_v23, %s1538_s16  ;;  %366 = vrot.lane.b32.xlu2 %v1741_v24, %s1537_s15  ;;  %v1839_v57 = vpop.permute.xlu2 %615 }
  0xbb   : > { %482 = vrot.lane.b32.xlu0 %v1739_v23, %s1539_s17 }
  0xbd   : > { %v311_v35 = vpop.f32.mrf.mxu0 }
  0xbe   : > { %v330_v36 = vpop.f32.mrf.mxu1  ;;  %v312_v37 = vadd.f32 %v311_v35, %v273_v34 }
  0xbf   : > { %v331_v38 = vadd.f32 %v330_v36, %v273_v34 }
  0xc0   : > { %v1789_v40 = vmax.f32 %v312_v37, 0.0  ;;  %v1853_v1 = vpop.permute.xlu0 %516 }
  0xc1   : > { %v1791_v41 = vmax.f32 %v331_v38, 0.0 }
  0xc2   : > { %654 = vrot.lane.b32.xlu1 %v1741_v24, %s1538_s16  ;;  %417 = vrot.lane.b32.xlu2 %v1739_v23, %s1535_s23  ;;  %v444_v56 = vpop.permute.xlu1 %443 }
  0xc3   : > { %557 = vrot.lane.b32.xlu0 %v1741_v24, %s1536_s13 }
  0xc5   : > { %v313_v50 = vpop.f32.mrf.mxu0 }
  0xc6   : > { %v332_v45 = vpop.f32.mrf.mxu1  ;;  %v314_v51 = vadd.f32 %v313_v50, %v278_v42 }
  0xc7   : > { %v333_v47 = vadd.f32 %v332_v45, %v278_v42 }
  0xc8   : > { %v1823_v53 = vmax.f32 %v314_v51, 0.0  ;;  %v630_v51 = vmul.f32 %v1839_v57, %v1739_v23 }
  0xc9   : > { %v1811_v48 = vmax.f32 %v333_v47, 0.0  ;;  %v1878_v12 = vpop.permute.xlu0 %619 }
  0xca   : > { %427 = vrot.lane.b32.xlu1 %v1761_v28, %s1535_s23  ;;  %490 = vrot.lane.b32.xlu2 %v1741_v24, %s1539_s17  ;;  %v1843_v59 = vpop.permute.xlu1 %451  ;;  %v632_v26 = vmul.f32 %v1878_v12, %v1771_v32 }
  0xcb   : > { %368 = vrot.lane.b32.xlu0 %v1761_v28, %s1537_s15 }
  0xd2   : > { %484 = vrot.lane.b32.xlu1 %v1771_v32, %s1539_s17  ;;  %360 = vrot.lane.b32.xlu2 %v1771_v32, %s1537_s15 }
  0xd3   : > { %419 = vrot.lane.b32.xlu0 %v1771_v32, %s1535_s23  ;;  %v1849_v62 = vpop.permute.xlu1 %575 }
  0xda   : > { %559 = vrot.lane.b32.xlu1 %v1761_v28, %s1536_s13  ;;  %551 = vrot.lane.b32.xlu2 %v1771_v32, %s1536_s13 }
  0xdb   : > { %492 = vrot.lane.b32.xlu0 %v1761_v28, %s1539_s17 }
  0xdc   : > { %v1875_v10 = vpop.permute.xlu1 %520 }
  0xe2   : > { %370 = vrot.lane.b32.xlu1 %v1791_v41, %s1537_s15  ;;  %648 = vrot.lane.b32.xlu2 %v1771_v32, %s1538_s16 }
  0xe3   : > { %362 = vrot.lane.b32.xlu0 %v1789_v40, %s1537_s15 }
  0xea   : > { %421 = vrot.lane.b32.xlu1 %v1789_v40, %s1535_s23  ;;  %656 = vrot.lane.b32.xlu2 %v1761_v28, %s1538_s16 }
  0xeb   : > { %561 = vrot.lane.b32.xlu0 %v1791_v41, %s1536_s13 }
  0xf2   : > { %486 = vrot.lane.b32.xlu1 %v1789_v40, %s1539_s17  ;;  %429 = vrot.lane.b32.xlu2 %v1791_v41, %s1535_s23 }
  0xf3   : > { %431 = vrot.lane.b32.xlu0 %v1811_v48, %s1535_s23 }
  0xfa   : > { %364 = vrot.lane.b32.xlu1 %v1823_v53, %s1537_s15  ;;  %494 = vrot.lane.b32.xlu2 %v1791_v41, %s1539_s17 }
  0xfb   : > { %488 = vrot.lane.b32.xlu0 %v1823_v53, %s1539_s17 }
 0x102   : > { %496 = vrot.lane.b32.xlu1 %v1811_v48, %s1539_s17  ;;  %553 = vrot.lane.b32.xlu2 %v1789_v40, %s1536_s13  ;;  %s1549_s17 = smov 8  }
 0x103   : > { %555 = vrot.lane.b32.xlu0 %v1823_v53, %s1536_s13 }
 0x10a   : > { %672 = vperm.xlu1 %1384, %v1688_v3   ;;  %372 = vrot.lane.b32.xlu2 %v1811_v48, %s1537_s15 }
 0x10b   : > { %587 = vperm.xlu0 %1383, %v1711_v13  }
 0x10c   : > { %v359_v60 = vpop.permute.xlu2 %358 }
 0x112   : > { %563 = vrot.lane.b32.xlu1 %v1811_v48, %s1536_s13  ;;  %423 = vrot.lane.b32.xlu2 %v1823_v53, %s1535_s23 }
 0x113   : > { %658 = vrot.lane.b32.xlu0 %v1791_v41, %s1538_s16  ;;  %1386 = vset.pattern.permute.xlu1 %v1534_v17 }
 0x114   : > { %1387 = vset.pattern.permute.xlu0 %v1541_v4  ;;  %v367_v5 = vpop.permute.xlu2 %366 }
 0x115   : > { %v375_v6 = vsel %vm374_vm1, %v359_v60, %v367_v5  ;;  %v379_v7 = vsel %vm374_vm1, %v367_v5, %v359_v60 }
 0x116   : > { %v400_v20 = vmul.f32 %v385_v55, %v375_v6  ;;  %v399_v21 = vmul.f32 %v385_v55, %v379_v7 }
 0x118   : > { %v410_v36 = vsel %vm355_vm5, %v400_v20, 0.0  ;;  %v409_v37 = vsel %vm1904_vm6, %v399_v21, 0.0 }
 0x11a   : > { %623 = vperm.xlu1 %1386, %v1683_v2   ;;  %676 = vperm.xlu2 %1385, %v1703_v11  }
 0x11b   : > { %719 = vrot.lane.b32.xlu0 %v1741_v24, %s1542_s29 }
 0x11c   : > { %v418_v15 = vpop.permute.xlu2 %417 }
 0x122   : > { %711 = vrot.lane.b32.xlu1 %v1739_v23, %s1542_s29  ;;  %650 = vrot.lane.b32.xlu2 %v1789_v40, %s1538_s16 }
 0x123   : > { %737 = vperm.xlu0 %1387, %v1688_v3   ;;  %1388 = vset.pattern.permute.xlu1 %v1541_v4 }
 0x124   : > { %v550_v25 = vpop.permute.xlu1 %549  ;;  %v491_v31 = vpop.permute.xlu2 %490 }
 0x125   : > { %v426_v22 = vpop.permute.xlu0 %425 }
 0x126   : > { %v434_v27 = vsel %vm433_vm4, %v418_v15, %v426_v22  ;;  %v438_v30 = vsel %vm433_vm4, %v426_v22, %v418_v15 }
 0x127   : > { %v458_v34 = vmul.f32 %v444_v56, %v438_v30  ;;  %v459_v35 = vmul.f32 %v444_v56, %v434_v27 }
 0x129   : > { %v466_v38 = vsel %vm1887_vm2, %v458_v34, 0.0  ;;  %v475_v42 = vadd.f32 %v459_v35, %v410_v36 }
 0x12a   : > { %v474_v45 = vadd.f32 %v466_v38, %v409_v37  ;;  %721 = vrot.lane.b32.xlu1 %v1761_v28, %s1542_s29  ;;  %713 = vrot.lane.b32.xlu2 %v1771_v32, %s1542_s29 }
 0x12b   : > { %715 = vrot.lane.b32.xlu0 %v1789_v40, %s1542_s29 }
 0x12c   : > { %1390 = vset.pattern.permute.xlu0 %v1540_v43  ;;  %v647_v47 = vpop.permute.xlu1 %646  ;;  %v361_v60 = vpop.permute.xlu2 %360 }
 0x12d   : > { %v483_v50 = vpop.permute.xlu0 %482 }
 0x12e   : > { %v499_v55 = vsel %vm498_vm8, %v483_v50, %v491_v31  ;;  %v503_v56 = vsel %vm498_vm8, %v491_v31, %v483_v50 }
 0x12f   : > { %v523_v43 = vmul.f32 %v1787_v39, %v503_v56  ;;  %v524_v61 = vmul.f32 %v1787_v39, %v499_v55 }
 0x131   : > { %v533_v5 = vsel %vm1932_vm10, %v523_v43, 0.0  ;;  %v534_v6 = vsel %vm357_vm9, %v524_v61, 0.0 }
 0x132   : > { %v541_v7 = vadd.f32 %v533_v5, %v474_v45  ;;  %v542_v9 = vadd.f32 %v534_v6, %v475_v42  ;;  %741 = vperm.xlu1 %1388, %v1703_v11   ;;  %680 = vperm.xlu2 %1385, %v1683_v2   ;;  %v1545_v6 = vmov 7  }
 0x133   : > { %780 = vrot.lane.b32.xlu0 %v1771_v32, %s1543_s26 }
 0x134   : > { %v655_v39 = vpop.permute.xlu1 %654  ;;  %v552_v30 = vpop.permute.xlu2 %551 }
 0x135   : > { %v558_v15 = vpop.permute.xlu0 %557  ;;  %v1954_v20 = vsel %vm662_vm11, %v647_v47, %v655_v39  ;;  %v1958_v21 = vsel %vm662_vm11, %v655_v39, %v647_v47 }
 0x136   : > { %v566_v22 = vsel %vm565_vm12, %v550_v25, %v558_v15  ;;  %v570_v27 = vsel %vm565_vm12, %v558_v15, %v550_v25 }
 0x137   : > { %v590_v31 = vmul.f32 %v1849_v62, %v570_v27  ;;  %v591_v34 = vmul.f32 %v1849_v62, %v566_v22 }
 0x139   : > { %v598_v35 = vsel %vm354_vm3, %v590_v31, 0.0  ;;  %v599_v36 = vsel %vm355_vm5, %v591_v34, 0.0 }
 0x13a   : > { %v1970_v37 = vadd.f32 %v598_v35, %v541_v7  ;;  %v1972_v38 = vadd.f32 %v599_v36, %v542_v9  ;;  %652 = vrot.lane.b32.xlu1 %v1823_v53, %s1538_s16  ;;  %1389 = vset.pattern.permute.xlu2 %v1534_v17  ;;  %v1544_v17 = vmov 8  }
 0x13b   : > { %684 = vperm.xlu0 %1390, %v1711_v13   ;;  %627 = vperm.xlu2 %1389, %v1711_v13  }
 0x13c   : > { %v428_v62 = vpop.permute.xlu1 %427  ;;  %v649_v47 = vpop.permute.xlu2 %648 }
 0x13d   : > { %v369_v25 = vpop.permute.xlu0 %368 }
 0x13e   : > { %v376_v42 = vsel %vm374_vm1, %v361_v60, %v369_v25  ;;  %v380_v45 = vsel %vm374_vm1, %v369_v25, %v361_v60 }
 0x13f   : > { %v402_v50 = vmul.f32 %v1803_v46, %v376_v42  ;;  %v401_v55 = vmul.f32 %v1803_v46, %v380_v45 }
 0x141   : > { %v412_v15 = vsel %vm355_vm5, %v402_v50, 0.0  ;;  %v411_v22 = vsel %vm1904_vm6, %v401_v55, 0.0 }
 0x142   : > { %723 = vrot.lane.b32.xlu1 %v1791_v41, %s1542_s29 }
 0x143   : > { %725 = vrot.lane.b32.xlu0 %v1811_v48, %s1542_s29  ;;  %660 = vrot.lane.b32.xlu2 %v1811_v48, %s1538_s16  ;;  %s1180_s16 = scalar_lea.hbm %s2498_s5, %s1297_s7 }
 0x144   : > { %1394 = vset.pattern.permute.xlu0 %v1544_v17  ;;  %v485_v56 = vpop.permute.xlu1 %484  ;;  %v657_v5 = vpop.permute.xlu2 %656  ;;  %1391 = vset.pattern.permute.xlu2 %v1545_v6 }
 0x145   : > { %v420_v43 = vpop.permute.xlu0 %419  ;;  %v2001_v46 = vsel %vm662_vm11, %v649_v47, %v657_v5  ;;  %v2005_v39 = vsel %vm662_vm11, %v657_v5, %v649_v47 }
 0x146   : > { %v435_v60 = vsel %vm433_vm4, %v420_v43, %v428_v62  ;;  %v439_v61 = vsel %vm433_vm4, %v428_v62, %v420_v43 }
 0x147   : > { %v460_v7 = vmul.f32 %v1777_v33, %v439_v61  ;;  %v461_v9 = vmul.f32 %v1777_v33, %v435_v60 }
 0x149   : > { %v468_v27 = vsel %vm1887_vm2, %v460_v7, 0.0  ;;  %v477_v31 = vadd.f32 %v461_v9, %v412_v15 }
 0x14a   : > { %v476_v34 = vadd.f32 %v468_v27, %v411_v22  ;;  %786 = vrot.lane.b32.xlu1 %v1741_v24, %s1543_s26 }
 0x14b   : > { %843 = vrot.lane.b32.xlu0 %v1739_v23, %s1546_s8  ;;  %778 = vrot.lane.b32.xlu2 %v1739_v23, %s1543_s26 }
 0x14c   : > { %v560_v33 = vpop.permute.xlu1 %559  ;;  %v430_v45 = vpop.permute.xlu2 %429 }
 0x14d   : > { %v493_v35 = vpop.permute.xlu0 %492  ;;  %v567_v36 = vsel %vm565_vm12, %v552_v30, %v560_v33  ;;  %v571_v62 = vsel %vm565_vm12, %v560_v33, %v552_v30 }
 0x14e   : > { %v500_v25 = vsel %vm498_vm8, %v485_v56, %v493_v35  ;;  %v504_v42 = vsel %vm498_vm8, %v493_v35, %v485_v56  ;;  %v592_v47 = vmul.f32 %v1813_v49, %v571_v62  ;;  %v593_v50 = vmul.f32 %v1813_v49, %v567_v36 }
 0x14f   : > { %v525_v55 = vmul.f32 %v1841_v58, %v504_v42  ;;  %v526_v43 = vmul.f32 %v1841_v58, %v500_v25 }
 0x150   : > { %v600_v56 = vsel %vm354_vm3, %v592_v47, 0.0  ;;  %v601_v7 = vsel %vm355_vm5, %v593_v50, 0.0 }
 0x151   : > { %v535_v60 = vsel %vm1932_vm10, %v525_v55, 0.0  ;;  %v536_v30 = vsel %vm357_vm9, %v526_v43, 0.0 }
 0x152   : > { %v543_v61 = vadd.f32 %v535_v60, %v476_v34  ;;  %v544_v5 = vadd.f32 %v536_v30, %v477_v31  ;;  %745 = vperm.xlu1 %1388, %v1683_v2  }
 0x153   : > { %853 = vrot.lane.b32.xlu0 %v1761_v28, %s1546_s8  ;;  %788 = vrot.lane.b32.xlu2 %v1761_v28, %s1543_s26 }
 0x154   : > { %v2042_v49 = vadd.f32 %v600_v56, %v543_v61  ;;  %v2044_v58 = vadd.f32 %v601_v7, %v544_v5  ;;  %v371_v9 = vpop.permute.xlu1 %370  ;;  %v495_v31 = vpop.permute.xlu2 %494 }
 0x155   : > { %v363_v15 = vpop.permute.xlu0 %362 }
 0x156   : > { %v377_v22 = vsel %vm374_vm1, %v363_v15, %v371_v9  ;;  %v381_v27 = vsel %vm374_vm1, %v371_v9, %v363_v15 }
 0x157   : > { %v404_v34 = vmul.f32 %v1763_v29, %v377_v22  ;;  %v403_v33 = vmul.f32 %v1763_v29, %v381_v27 }
 0x159   : > { %v414_v43 = vsel %vm355_vm5, %v404_v34, 0.0  ;;  %v413_v60 = vsel %vm1904_vm6, %v403_v33, 0.0 }
 0x15a   : > { %1392 = vset.pattern.permute.xlu1 %v1545_v6 }
 0x15b   : > { %869 = vperm.xlu0 %1394, %v1688_v3   ;;  %808 = vperm.xlu1 %1392, %v1703_v11  }
 0x15c   : > { %804 = vperm.xlu2 %1391, %v1688_v3   ;;  %v422_v35 = vpop.permute.xlu1 %421  ;;  %v554_v42 = vpop.permute.xlu2 %553 }
 0x15d   : > { %v562_v36 = vpop.permute.xlu0 %561  ;;  %v436_v62 = vsel %vm433_vm4, %v422_v35, %v430_v45  ;;  %v440_v25 = vsel %vm433_vm4, %v430_v45, %v422_v35 }
 0x15e   : > { %v462_v47 = vmul.f32 %v1843_v59, %v440_v25  ;;  %v463_v50 = vmul.f32 %v1843_v59, %v436_v62  ;;  %v568_v55 = vsel %vm565_vm12, %v554_v42, %v562_v36  ;;  %v572_v29 = vsel %vm565_vm12, %v562_v36, %v554_v42 }
 0x15f   : > { %v1547_v59 = vmov 26   ;;  %v594_v22 = vmul.f32 %v1829_v54, %v572_v29  ;;  %v595_v27 = vmul.f32 %v1829_v54, %v568_v55 }
 0x160   : > { %v470_v45 = vsel %vm1887_vm2, %v462_v47, 0.0  ;;  %v479_v30 = vadd.f32 %v463_v50, %v414_v43 }
 0x161   : > { %v478_v61 = vadd.f32 %v470_v45, %v413_v60  ;;  %v603_v25 = vsel %vm355_vm5, %v595_v27, 0.0  ;;  %v633_v27 = vmul.f32 %v1878_v12, %v1761_v28 }
 0x163   : > { %855 = vrot.lane.b32.xlu0 %v1791_v41, %s1546_s8  ;;  %782 = vrot.lane.b32.xlu1 %v1789_v40, %s1543_s26 }
 0x164   : > { %1398 = vset.pattern.permute.xlu0 %v1547_v59  ;;  %717 = vrot.lane.b32.xlu2 %v1823_v53, %s1542_s29  ;;  %v487_v5 = vpop.permute.xlu1 %486  ;;  %v373_v15 = vpop.permute.xlu2 %372  ;;  %s1183_s29 = sshll.u32 %s1180_s16, 4  ;;  %s1184_s29 = int_to_ptr.hbm [resolvable:$true] %s1183_s29 }
 0x165   : > { %v432_v56 = vpop.permute.xlu0 %431  ;;  %1393 = vset.pattern.permute.xlu1 %v1541_v4  ;;  %v501_v7 = vsel %vm498_vm8, %v487_v5, %v495_v31  ;;  %v505_v9 = vsel %vm498_vm8, %v495_v31, %v487_v5  ;;  %v602_v31 = vsel %vm354_vm3, %v594_v22, 0.0  ;;  %s1473_s14 = sshra.s32 %s1184_s29, 4  ;;  %s1474_s14 = int_to_ptr.hbm [resolvable:$true] %s1473_s14 }
 0x166   : > { %v527_v34 = vmul.f32 %v1853_v1, %v505_v9  ;;  %v528_v33 = vmul.f32 %v1853_v1, %v501_v7  ;;  %p1480_p0 = scmp.lt.s32.totalorder %s1474_s14, %s2498_s5 }
 0x168   : > { %v537_v35 = vsel %vm1932_vm10, %v527_v34, 0.0  ;;  %v538_v4 = vsel %vm357_vm9, %v528_v33, 0.0 }
 0x169   : > { %v545_v36 = vadd.f32 %v537_v35, %v478_v61  ;;  %v546_v62 = vadd.f32 %v538_v4, %v479_v30 }
 0x16b   : > { %849 = vrot.lane.b32.xlu0 %v1823_v53, %s1546_s8  ;;  %845 = vrot.lane.b32.xlu1 %v1771_v32, %s1546_s8  ;;  %v2102_v54 = vadd.f32 %v602_v31, %v545_v36  ;;  %v2104_v1 = vadd.f32 %v603_v25, %v546_v62  ;;  %v640_v32 = vadd.f32 %v632_v26, %v2042_v49 }
 0x16c   : > { %790 = vrot.lane.b32.xlu2 %v1791_v41, %s1543_s26  ;;  %v365_v42 = vpop.permute.xlu1 %364  ;;  %v424_v29 = vpop.permute.xlu2 %423  ;;  %v641_v62 = vadd.f32 %v633_v27, %v2044_v58  ;;  %v631_v49 = vmul.f32 %v1839_v57, %v1741_v24 }
 0x16d   : > { %v489_v47 = vpop.permute.xlu0 %488  ;;  %v378_v50 = vsel %vm374_vm1, %v365_v42, %v373_v15  ;;  %v382_v55 = vsel %vm374_vm1, %v373_v15, %v365_v42  ;;  %v437_v45 = vsel %vm433_vm4, %v424_v29, %v432_v56  ;;  %v441_v30 = vsel %vm433_vm4, %v432_v56, %v424_v29 }
 0x16e   : > { %v405_v43 = vmul.f32 %v1821_v52, %v382_v55  ;;  %v406_v60 = vmul.f32 %v1821_v52, %v378_v50  ;;  %v464_v61 = vmul.f32 %v1801_v44, %v441_v30  ;;  %v465_v5 = vmul.f32 %v1801_v44, %v437_v45 }
 0x16f   : > { %vm859_vm1 = vcmp.lt.s32.totalorder %v1851_v63, 111  ;;  %vm969_vm4 = vcmask 138312  }
 0x170   : > { %v415_v7 = vsel %vm1904_vm6, %v405_v43, 0.0  ;;  %v416_v9 = vsel %vm355_vm5, %v406_v60, 0.0  ;;  %v472_v15 = vsel %vm1887_vm2, %v464_v61, 0.0  ;;  %v638_v43 = vadd.f32 %v630_v51, %v1970_v37  ;;  %vm2308_vm2 = vmand %vm2208_vm14, %vm357_vm9 }
 0x171   : > { %v481_v52 = vadd.f32 %v465_v5, %v416_v9  ;;  %v480_v22 = vadd.f32 %v472_v15, %v415_v7  ;;  %v639_v60 = vadd.f32 %v631_v49, %v1972_v38 }
 0x173   : > { %911 = vperm.xlu0 %1398, %v1688_v3   ;;  %749 = vperm.xlu1 %1393, %v1711_v13  }
 0x174   : > { %851 = vrot.lane.b32.xlu2 %v1741_v24, %s1546_s8  ;;  %v497_v56 = vpop.permute.xlu1 %496  ;;  %v677_v3 = vpop.permute.xlu2 %676 }
 0x175   : > { %v556_v44 = vpop.permute.xlu0 %555  ;;  %v502_v19 = vsel %vm498_vm8, %v489_v47, %v497_v56  ;;  %v506_v34 = vsel %vm498_vm8, %v497_v56, %v489_v47  ;;  %v689_v4 = vmul.f32 %v677_v3, %v2001_v46  ;;  %v690_v36 = vmul.f32 %v677_v3, %v2005_v39 }
 0x176   : > { %v529_v33 = vmul.f32 %v1875_v10, %v506_v34  ;;  %v530_v35 = vmul.f32 %v1875_v10, %v502_v19 }
 0x177   : > { %v697_v31 = vsel %vm356_vm7, %v689_v4, 0.0  ;;  %v698_v10 = vsel %vm357_vm9, %v690_v36, 0.0 }
 0x178   : > { %v539_v28 = vsel %vm1932_vm10, %v529_v33, 0.0  ;;  %v540_v12 = vsel %vm357_vm9, %v530_v35, 0.0  ;;  %v2152_v42 = vadd.f32 %v697_v31, %v640_v32  ;;  %v2154_v39 = vadd.f32 %v698_v10, %v641_v62 }
 0x179   : > { %v547_v25 = vadd.f32 %v539_v28, %v480_v22  ;;  %v548_v46 = vadd.f32 %v540_v12, %v481_v52 }
 0x17b   : > { %1401 = vset.pattern.permute.xlu0 %v1529_v0  ;;  %1395 = vset.pattern.permute.xlu1 %v1544_v17 }
 0x17c   : > { %812 = vperm.xlu2 %1391, %v1683_v2   ;;  %873 = vperm.xlu1 %1395, %v1703_v11   ;;  %v673_v58 = vpop.permute.xlu1 %672  ;;  %v651_v29 = vpop.permute.xlu2 %650 }
 0x17d   : > { %v588_v47 = vpop.permute.xlu0 %587  ;;  %v687_v50 = vmul.f32 %v673_v58, %v1954_v20  ;;  %v688_v55 = vmul.f32 %v673_v58, %v1958_v21 }
 0x17f   : > { %v695_v23 = vsel %vm356_vm7, %v687_v50, 0.0  ;;  %v696_v24 = vsel %vm357_vm9, %v688_v55, 0.0 }
 0x180   : > { %v703_v57 = vadd.f32 %v695_v23, %v638_v43  ;;  %v704_v45 = vadd.f32 %v696_v24, %v639_v60 }
 0x184   : > { %784 = vrot.lane.b32.xlu2 %v1823_v53, %s1543_s26  ;;  %792 = vrot.lane.b32.xlu1 %v1811_v48, %s1543_s26  ;;  %v564_v20 = vpop.permute.xlu1 %563  ;;  %v714_v5 = vpop.permute.xlu2 %713  ;;  %s1475_s26 = scalar_lea.hbm %s1474_s14, 32 }
 0x185   : > { %v659_v21 = vpop.permute.xlu0 %658  ;;  %v569_v37 = vsel %vm565_vm12, %v556_v44, %v564_v20  ;;  %v573_v38 = vsel %vm565_vm12, %v564_v20, %v556_v44  ;;  %1396 = vset.pattern.permute.xlu1 %v1545_v6  ;;  %1397 = vset.pattern.permute.xlu2 %v1544_v17  ;;  %p1476_p6 = scmp.ne.s32.totalorder %s1474_s14, %s1475_s26  ;;  %p1481_p1 = scmp.lt.s32.totalorder %s1479_s9, %s1475_s26 }
 0x186   : > { %v665_v30 = vsel %vm662_vm11, %v651_v29, %v659_v21  ;;  %v669_v61 = vsel %vm662_vm11, %v659_v21, %v651_v29  ;;  %v596_v7 = vmul.f32 %v588_v47, %v573_v38  ;;  %v597_v9 = vmul.f32 %v588_v47, %v569_v37 }
 0x187   : > { %p1477_p9 = pnand %p1476_p6, %p1631_p11  ;;  %p1482_p3 = por %p1481_p1, %p1480_p0 }
 0x188   : > { %v604_v15 = vsel %vm354_vm3, %v596_v7, 0.0  ;;  %v605_v52 = vsel %vm355_vm5, %v597_v9, 0.0  ;;  %vm1008_vm5 = vcmask 64512  }
 0x189   : > { %v612_v22 = vadd.f32 %v604_v15, %v547_v25  ;;  %v613_v56 = vadd.f32 %v605_v52, %v548_v46  ;;  %p1478_p13 = pneg %p1477_p9 }
 0x18b   : > { %p1483_p4 = pnand %p1482_p3, %p1478_p13 }
 0x18c   : > { %847 = vrot.lane.b32.xlu2 %v1789_v40, %s1546_s8  ;;  %816 = vperm.xlu1 %1396, %v1711_v13   ;;  %v624_v44 = vpop.permute.xlu1 %623  ;;  %v681_v17 = vpop.permute.xlu2 %680 }
 0x18d   : > { %v720_v26 = vpop.permute.xlu0 %719  ;;  %v634_v6 = vmul.f32 %v624_v44, %v1789_v40  ;;  %v635_v27 = vmul.f32 %v624_v44, %v1791_v41  ;;  %v691_v19 = vmul.f32 %v681_v17, %v665_v30  ;;  %v692_v34 = vmul.f32 %v681_v17, %v669_v61 }
 0x18f   : > { %v642_v3 = vadd.f32 %v634_v6, %v2102_v54  ;;  %v643_v33 = vadd.f32 %v635_v27, %v2104_v1  ;;  %v699_v35 = vsel %vm356_vm7, %v691_v19, 0.0  ;;  %v700_v4 = vsel %vm357_vm9, %v692_v34, 0.0 }
 0x191   : > { %v2201_v36 = vadd.f32 %v699_v35, %v642_v3  ;;  %v2203_v32 = vadd.f32 %v700_v4, %v643_v33 }
 0x194   : > { %877 = vperm.xlu2 %1397, %v1683_v2   ;;  %857 = vrot.lane.b32.xlu1 %v1811_v48, %s1546_s8  ;;  %v712_v41 = vpop.permute.xlu1 %711 }
 0x195   : > { %v738_v54 = vpop.permute.xlu0 %737  ;;  %v728_v1 = vsel %vm727_vm13, %v712_v41, %v720_v26  ;;  %v732_v62 = vsel %vm727_vm13, %v720_v26, %v712_v41  ;;  %1399 = vset.pattern.permute.xlu1 %v1547_v59  ;;  %v628_v12 = vpop.permute.xlu2 %627 }
 0x196   : > { %v752_v14 = vmul.f32 %v738_v54, %v728_v1  ;;  %v753_v28 = vmul.f32 %v738_v54, %v732_v62  ;;  %v636_v31 = vmul.f32 %v628_v12, %v1823_v53  ;;  %v637_v10 = vmul.f32 %v628_v12, %v1811_v48 }
 0x198   : > { %v762_v25 = vsel %vm354_vm3, %v752_v14, 0.0  ;;  %v763_v46 = vsel %vm2223_vm15, %v753_v28, 0.0  ;;  %v644_v58 = vadd.f32 %v636_v31, %v612_v22  ;;  %v645_v47 = vadd.f32 %v637_v10, %v613_v56 }
 0x199   : > { %v2234_v51 = vadd.f32 %v762_v25, %v703_v57  ;;  %v2236_v49 = vadd.f32 %v763_v46, %v704_v45 }
 0x19c   : > { %881 = vperm.xlu2 %1397, %v1711_v13   ;;  %915 = vperm.xlu1 %1399, %v1703_v11   ;;  %v722_v50 = vpop.permute.xlu1 %721 }
 0x19d   : > { %v716_v53 = vpop.permute.xlu0 %715  ;;  %v729_v48 = vsel %vm727_vm13, %v714_v5, %v722_v50  ;;  %v733_v55 = vsel %vm727_vm13, %v722_v50, %v714_v5  ;;  %v661_v29 = vpop.permute.xlu2 %660 }
 0x1a4   : > { %1400 = vset.pattern.permute.xlu2 %v1547_v59  ;;  %923 = vperm.xlu1 %1399, %v1711_v13   ;;  %v742_v43 = vpop.permute.xlu1 %741 }
 0x1a5   : > { %v781_v60 = vpop.permute.xlu0 %780  ;;  %v754_v23 = vmul.f32 %v742_v43, %v729_v48  ;;  %v755_v24 = vmul.f32 %v742_v43, %v733_v55  ;;  %919 = vperm.xlu2 %1400, %v1683_v2   ;;  %v779_v11 = vpop.permute.xlu2 %778 }
 0x1a7   : > { %v764_v57 = vsel %vm354_vm3, %v754_v23, 0.0  ;;  %v765_v45 = vsel %vm2223_vm15, %v755_v24, 0.0 }
 0x1a8   : > { %v772_v20 = vadd.f32 %v764_v57, %v2152_v42  ;;  %v773_v21 = vadd.f32 %v765_v45, %v2154_v39 }
 0x1ac   : > { %v653_v59 = vpop.permute.xlu1 %652 }
 0x1ad   : > { %v685_v37 = vpop.permute.xlu0 %684  ;;  %v666_v13 = vsel %vm662_vm11, %v653_v59, %v661_v29  ;;  %v670_v2 = vsel %vm662_vm11, %v661_v29, %v653_v59  ;;  %1402 = vset.pattern.permute.xlu2 %v1529_v0  ;;  %v789_v61 = vpop.permute.xlu2 %788 }
 0x1ae   : > { %v693_v38 = vmul.f32 %v685_v37, %v666_v13  ;;  %v694_v30 = vmul.f32 %v685_v37, %v670_v2  ;;  %v796_v42 = vsel %vm794_vm0, %v781_v60, %v789_v61  ;;  %v800_v39 = vsel %vm794_vm0, %v789_v61, %v781_v60 }
 0x1b0   : > { %v701_v5 = vsel %vm356_vm7, %v693_v38, 0.0  ;;  %v702_v7 = vsel %vm357_vm9, %v694_v30, 0.0 }
 0x1b1   : > { %v2267_v9 = vadd.f32 %v701_v5, %v644_v58  ;;  %v2269_v15 = vadd.f32 %v702_v7, %v645_v47 }
 0x1b4   : > { %v724_v0 = vpop.permute.xlu1 %723 }
 0x1b5   : > { %v726_v52 = vpop.permute.xlu0 %725  ;;  %v730_v17 = vsel %vm727_vm13, %v716_v53, %v724_v0  ;;  %v734_v19 = vsel %vm727_vm13, %v724_v0, %v716_v53 }
 0x1b6   : > { %v805_v22 = vpop.permute.xlu2 %804 }
 0x1bc   : > { %v787_v56 = vpop.permute.xlu1 %786 }
 0x1bd   : > { %v844_v44 = vpop.permute.xlu0 %843  ;;  %v795_v55 = vsel %vm794_vm0, %v779_v11, %v787_v56 }
 0x1be   : > { %v718_v26 = vpop.permute.xlu2 %717  ;;  %v819_v24 = vmul.f32 %v805_v22, %v795_v55 }
 0x1bf   : > { %v731_v6 = vsel %vm727_vm13, %v718_v26, %v726_v52  ;;  %v735_v27 = vsel %vm727_vm13, %v726_v52, %v718_v26 }
 0x1c0   : > { %v835_v37 = vadd.f32 %v819_v24, %v2234_v51 }
 0x1c4   : > { %v746_v34 = vpop.permute.xlu1 %745 }
 0x1c5   : > { %v854_v3 = vpop.permute.xlu0 %853  ;;  %v756_v33 = vmul.f32 %v746_v34, %v730_v17  ;;  %v757_v35 = vmul.f32 %v746_v34, %v734_v19 }
 0x1c6   : > { %v2279_v4 = vpop.permute.xlu2 %790 }
 0x1c7   : > { %v766_v41 = vsel %vm354_vm3, %v756_v33, 0.0  ;;  %v767_v54 = vsel %vm2223_vm15, %v757_v35, 0.0 }
 0x1c8   : > { %v2286_v1 = vadd.f32 %v766_v41, %v2201_v36  ;;  %v2289_v62 = vadd.f32 %v767_v54, %v2203_v32  ;;  %v799_v36 = vsel %vm794_vm0, %v787_v56, %v779_v11 }
 0x1c9   : > { %v820_v29 = vmul.f32 %v805_v22, %v799_v36 }
 0x1cd   : > { %v870_v14 = vpop.permute.xlu0 %869  ;;  %v809_v28 = vpop.permute.xlu1 %808 }
 0x1ce   : > { %v821_v12 = vmul.f32 %v809_v28, %v796_v42  ;;  %v822_v31 = vmul.f32 %v809_v28, %v800_v39  ;;  %v852_v10 = vpop.permute.xlu2 %851 }
 0x1cf   : > { %v860_v32 = vsel %vm859_vm1, %v844_v44, %v852_v10  ;;  %v864_v48 = vsel %vm859_vm1, %v852_v10, %v844_v44 }
 0x1d0   : > { %v830_v25 = vsel %vm2208_vm14, %v822_v31, 0.0  ;;  %v837_v46 = vadd.f32 %v821_v12, %v772_v20  ;;  %v884_v43 = vmul.f32 %v870_v14, %v860_v32  ;;  %v885_v60 = vmul.f32 %v870_v14, %v864_v48 }
 0x1d1   : > { %v838_v58 = vadd.f32 %v830_v25, %v773_v21  ;;  %v828_v20 = vsel %vm2208_vm14, %v820_v29, 0.0 }
 0x1d2   : > { %v894_v11 = vsel %vm356_vm7, %v884_v43, 0.0  ;;  %v895_v59 = vsel %vm2308_vm2, %v885_v60, 0.0  ;;  %v836_v18 = vadd.f32 %v828_v20, %v2236_v49 }
 0x1d3   : > { %v902_v13 = vadd.f32 %v894_v11, %v835_v37 }
 0x1d4   : > { %v903_v2 = vadd.f32 %v895_v59, %v836_v18 }
 0x1d5   : > { %v856_v47 = vpop.permute.xlu0 %855  ;;  %v783_v50 = vpop.permute.xlu1 %782 }
 0x1d6   : > { %v813_v53 = vpop.permute.xlu2 %812  ;;  %v801_v34 = vsel %vm794_vm0, %v2279_v4, %v783_v50 }
 0x1d7   : > { %v824_v41 = vmul.f32 %v813_v53, %v801_v34 }
 0x1dd   : > { %v2302_v23 = vpop.permute.xlu0 %849  ;;  %v846_v57 = vpop.permute.xlu1 %845 }
 0x1de   : > { %v2314_v21 = vpop.permute.xlu2 %784  ;;  %v861_v26 = vsel %vm859_vm1, %v846_v57, %v854_v3 }
 0x1e5   : > { %v912_v38 = vpop.permute.xlu0 %911  ;;  %v750_v42 = vpop.permute.xlu1 %749 }
 0x1e6   : > { %v2322_v30 = vadd.f32 %v912_v38, %v902_v13  ;;  %v2324_v61 = vadd.f32 %v912_v38, %v903_v2  ;;  %v758_v39 = vmul.f32 %v750_v42, %v731_v6  ;;  %v759_v5 = vmul.f32 %v750_v42, %v735_v27  ;;  %v848_v7 = vpop.permute.xlu2 %847 }
 0x1e7   : > { %v865_v6 = vsel %vm859_vm1, %v854_v3, %v846_v57  ;;  %v797_v3 = vsel %vm794_vm0, %v783_v50, %v2279_v4  ;;  %v862_v54 = vsel %vm859_vm1, %v848_v7, %v856_v47  ;;  %v866_v14 = vsel %vm859_vm1, %v856_v47, %v848_v7 }
 0x1e8   : > { %v934_v0 = vmax.f32 %v2322_v30, 0.0  ;;  %v935_v52 = vmax.f32 %v2324_v61, 0.0  ;;  %v768_v51 = vsel %vm354_vm3, %v758_v39, 0.0  ;;  %v769_v49 = vsel %vm2223_vm15, %v759_v5, 0.0 }
 0x1e9   : > { %v776_v22 = vadd.f32 %v768_v51, %v2267_v9  ;;  %v777_v56 = vadd.f32 %v769_v49, %v2269_v15  ;;  %v823_v25 = vmul.f32 %v813_v53, %v797_v3 }
 0x1ea   : > { %v942_v44 = vadd.f32 %v935_v52, %v934_v0 }
 0x1eb   : > { %v839_v50 = vadd.f32 %v823_v25, %v2286_v1 }
 0x1ec   : > { %943 = vadd.xlane.f32.xlu2 %v942_v44 }
 0x1ee   : > { %v878_v27 = vpop.permute.xlu2 %877  ;;  %v874_v17 = vpop.permute.xlu1 %873 }
 0x1ef   : > { %v886_v8 = vmul.f32 %v874_v17, %v861_v26  ;;  %v887_v19 = vmul.f32 %v874_v17, %v865_v6  ;;  %v888_v31 = vmul.f32 %v878_v27, %v862_v54  ;;  %v889_v10 = vmul.f32 %v878_v27, %v866_v14  ;;  %v1421_v14 = vld [vmem:[%s2495_s2] sm:$0xff] }
 0x1f1   : > { %v896_v9 = vsel %vm356_vm7, %v886_v8, 0.0  ;;  %v897_v15 = vsel %vm2308_vm2, %v887_v19, 0.0  ;;  %v899_v4 = vsel %vm2308_vm2, %v889_v10, 0.0 }
 0x1f2   : > { %v904_v33 = vadd.f32 %v896_v9, %v837_v46  ;;  %v905_v35 = vadd.f32 %v897_v15, %v838_v58  ;;  %v832_v46 = vsel %vm2208_vm14, %v824_v41, 0.0  ;;  %v898_v58 = vsel %vm356_vm7, %v888_v31, 0.0  ;;  %v1422_v31 = vld [vmem:[%s2495_s2 + $0x8] sm:$0xff] }
 0x1f3   : > { %v840_v36 = vadd.f32 %v832_v46, %v2289_v62  ;;  %v906_v47 = vadd.f32 %v898_v58, %v839_v50  ;;  %v1423_v58 = vld [vmem:[%s2495_s2 + $0x10] sm:$0xff] }
 0x1f5   : > { %v907_v48 = vadd.f32 %v899_v4, %v840_v36 }
 0x1f6   : > { %v793_v28 = vpop.permute.xlu1 %792  ;;  %v882_v12 = vpop.permute.xlu2 %881 }
 0x1f7   : > { %v802_v62 = vsel %vm794_vm0, %v793_v28, %v2314_v21  ;;  %v798_v59 = vsel %vm794_vm0, %v2314_v21, %v793_v28 }
 0x1fe   : > { %v817_v32 = vpop.permute.xlu1 %816 }
 0x1ff   : > { %v920_v55 = vpop.permute.xlu2 %919  ;;  %v826_v11 = vmul.f32 %v817_v32, %v802_v62  ;;  %v825_v2 = vmul.f32 %v817_v32, %v798_v59 }
 0x200   : > { %v2364_v29 = vadd.f32 %v920_v55, %v906_v47  ;;  %v2366_v53 = vadd.f32 %v920_v55, %v907_v48  ;;  %v1424_v48 = vld [vmem:[%s2495_s2 + $0x18] sm:$0xff] }
 0x201   : > { %v834_v39 = vsel %vm2208_vm14, %v826_v11, 0.0  ;;  %v841_v21 = vadd.f32 %v825_v2, %v776_v22 }
 0x202   : > { %v938_v43 = vmax.f32 %v2364_v29, 0.0  ;;  %v939_v60 = vmax.f32 %v2366_v53, 0.0  ;;  %v842_v51 = vadd.f32 %v834_v39, %v777_v56  ;;  %v1548_v56 = vmov 256.0  }
 0x203   : > { %1403 = vrcp.f32 %v1548_v56 }
 0x204   : > { %v948_v24 = vadd.f32 %v939_v60, %v938_v43 }
 0x206   : > { %949 = vadd.xlane.f32.xlu1 %v948_v24  ;;  %v858_v1 = vpop.permute.xlu1 %857 }
 0x207   : > { %v863_v57 = vsel %vm859_vm1, %v2302_v23, %v858_v1  ;;  %v867_v20 = vsel %vm859_vm1, %v858_v1, %v2302_v23 }
 0x208   : > { %v890_v37 = vmul.f32 %v882_v12, %v863_v57  ;;  %v891_v18 = vmul.f32 %v882_v12, %v867_v20 }
 0x209   : > { %v1404_v17 = vpop.eup %1403 }
 0x20a   : > { %v900_v7 = vsel %vm356_vm7, %v890_v37, 0.0  ;;  %v901_v63 = vsel %vm2308_vm2, %v891_v18, 0.0  ;;  %v955_v8 = vmul.f32 256.0, %v1404_v17  ;;  %vm959_vm3 = vweird.f32 %v1404_v17 }
 0x20b   : > { %v908_v40 = vadd.f32 %v900_v7, %v841_v21  ;;  %v909_v44 = vadd.f32 %v901_v63, %v842_v51 }
 0x20c   : > { %v956_v19 = vsub.f32 1.0, %v955_v8 }
 0x20e   : > { %v916_v13 = vpop.permute.xlu1 %915  ;;  %v957_v9 = vmul.f32 %v1404_v17, %v956_v19 }
 0x20f   : > { %v2386_v38 = vadd.f32 %v916_v13, %v904_v33  ;;  %v2388_v42 = vadd.f32 %v916_v13, %v905_v35 }
 0x210   : > { %v958_v15 = vadd.f32 %v1404_v17, %v957_v9 }
 0x211   : > { %v936_v5 = vmax.f32 %v2386_v38, 0.0  ;;  %v937_v23 = vmax.f32 %v2388_v42, 0.0  ;;  %v1296_v38 = vld [vmem:[%s2496_s3] sm:$0xff] }
 0x212   : > { %v960_v34 = vsel %vm959_vm3, %v1404_v17, %v958_v15 }
 0x213   : > { %v945_v49 = vadd.f32 %v937_v23, %v936_v5 }
 0x215   : > { %946 = vadd.xlane.f32.xlu0 %v945_v49 }
 0x216   : > { %v924_v26 = vpop.permute.xlu1 %923 }
 0x217   : > { %v2402_v6 = vadd.f32 %v924_v26, %v908_v40  ;;  %v2404_v27 = vadd.f32 %v924_v26, %v909_v44 }
 0x219   : > { %v940_v16 = vmax.f32 %v2402_v6, 0.0  ;;  %v941_v45 = vmax.f32 %v2404_v27, 0.0 }
 0x21b   : > { %v951_v22 = vadd.f32 %v941_v45, %v940_v16 }
 0x21d   : > { %952 = vadd.xlane.f32.xlu2 %v951_v22 }
 0x25f   : > { %v944_v33 = vpop.xlane.xlu2 %943 }
 0x260   : > { %v961_v35 = vmul.f32 %v960_v34, %v944_v33 }
 0x262   : > { %v965_v28 = vmul.f32 %v1421_v14, %v961_v35 }
 0x264   : > { %v970_v46 = vsel %vm969_vm4, %v965_v28, 0.0 }
 0x279   : > { %v950_v3 = vpop.xlane.xlu1 %949 }
 0x27a   : > { %v963_v12 = vmul.f32 %v960_v34, %v950_v3 }
 0x27c   : > { %v967_v4 = vmul.f32 %v1423_v58, %v963_v12  ;;  %v1111_v12 = vld [vmem:[%s2497_s4] sm:$0xff] }
 0x27e   : > { %v973_v47 = vsel %vm969_vm4, %v967_v4, 0.0 }
 0x288   : > { %v947_v41 = vpop.xlane.xlu0 %946 }
 0x289   : > { %v962_v54 = vmul.f32 %v960_v34, %v947_v41 }
 0x28b   : > { %v966_v10 = vmul.f32 %v1422_v31, %v962_v54 }
 0x28d   : > { %v971_v25 = vsel %vm969_vm4, %v966_v10, 0.0 }
 0x28e   : > { %v972_v50 = vadd.f32 %v971_v25, %v970_v46 }
 0x290   : > { %v953_v36 = vpop.xlane.xlu2 %952  ;;  %v974_v24 = vadd.f32 %v973_v47, %v972_v50 }
 0x291   : > { %v964_v32 = vmul.f32 %v960_v34, %v953_v36 }
 0x293   : > { %v968_v55 = vmul.f32 %v1424_v48, %v964_v32 }
 0x295   : > { %v975_v1 = vsel %vm969_vm4, %v968_v55, 0.0 }
 0x296   : > { %v976_v62 = vadd.f32 %v975_v1, %v974_v24 }
 0x298   : > { %v977_v57 = vrot.slane %v976_v62, 4 }
 0x29a   : > { %v978_v20 = vadd.f32 %v977_v57, %v976_v62 }
 0x29c   : > { %v979_v11 = vrot.slane %v978_v20, 2 }
 0x29e   : > { %v980_v59 = vadd.f32 %v979_v11, %v978_v20 }
 0x2a0   : > { %v981_v37 = vrot.slane %v980_v59, 1 }
 0x2a2   : > { %v982_v18 = vadd.f32 %v981_v37, %v980_v59 }
 0x2a4   : > { %v983_v13 = vmax.f32 %v982_v18, 0.0 }
 0x2a6   : > { %985 = vrot.lane.b32.xlu2 %v983_v13, %s1549_s17  ;;  %s1181_s17 = sshll.u32 %s244_s11, 4  ;;  %s1182_s17 = int_to_ptr.vmem [resolvable:$true] %s1181_s17 }
 0x300   : > { %v986_v2 = vpop.permute.xlu2 %985 }
 0x301   : > { %v991_v39 = vmul.f32 %v1424_v48, %v986_v2  ;;  %v990_v7 = vmul.f32 %v1423_v58, %v986_v2  ;;  %v989_v63 = vmul.f32 %v1422_v31, %v986_v2  ;;  %v988_v21 = vmul.f32 %v1421_v14, %v986_v2  ;;  %v1112_v31 = vld [vmem:[%s2497_s4 + $0x8] sm:$0xff] }
 0x303   : > { %1002 = vrot.lane.b32.xlu1 %v991_v39, %s1546_s8  ;;  %1000 = vrot.lane.b32.xlu0 %v990_v7, %s1546_s8 }
 0x304   : > { %998 = vrot.lane.b32.xlu2 %v989_v63, %s1546_s8 }
 0x30b   : > { %996 = vrot.lane.b32.xlu0 %v988_v21, %s1546_s8 }
 0x35e   : > { %v999_v26 = vpop.permute.xlu2 %998 }
 0x35f   : > { %v1012_v56 = vsel %vm1008_vm5, %v999_v26, 0.0 }
 0x375   : > { %v1003_v51 = vpop.permute.xlu1 %1002  ;;  %v1001_v49 = vpop.permute.xlu0 %1000 }
 0x376   : > { %v1015_v40 = vsel %vm1008_vm5, %v1001_v49, 0.0  ;;  %v1018_v44 = vsel %vm1008_vm5, %v1003_v51, 0.0 }
 0x377   : > { %1016 = vadd.xlane.f32.xlu1 %v1015_v40  ;;  %1019 = vadd.xlane.f32.xlu0 %v1018_v44 }
 0x37d   : > { %v997_v22 = vpop.permute.xlu0 %996 }
 0x37e   : > { %v1009_v17 = vsel %vm1008_vm5, %v997_v22, 0.0 }
 0x37f   : > { %1013 = vadd.xlane.f32.xlu1 %v1012_v56  ;;  %1010 = vadd.xlane.f32.xlu2 %v1009_v17 }
 0x38b   : > { %1115 = vperm.xlu0 %1401, %v1111_v12  }
 0x397   : > { %1120 = vperm.xlu2 %1402, %v1112_v31  }
 0x3ea   : > { %v1017_v8 = vpop.xlane.xlu1 %1016  ;;  %v1020_v19 = vpop.xlane.xlu0 %1019 }
 0x3eb   : > { %v1280_v9 = vmul.f32 -1.442695, %v1017_v8  ;;  %v1281_v15 = vmul.f32 -1.442695, %v1020_v19 }
 0x3ed   : > { %1405 = vpow2.f32 %v1280_v9 }
 0x3ee   : > { %1407 = vpow2.f32 %v1281_v15 }
 0x3f2   : > { %v1014_v34 = vpop.xlane.xlu1 %1013  ;;  %v1011_v33 = vpop.xlane.xlu2 %1010 }
 0x3f3   : > { %v1406_v35 = vpop.eup %1405  ;;  %v1279_v3 = vmul.f32 -1.442695, %v1014_v34  ;;  %v1278_v14 = vmul.f32 -1.442695, %v1011_v33 }
 0x3f4   : > { %v1408_v41 = vpop.eup %1407  ;;  %v1035_v54 = vadd.f32 1.0, %v1406_v35 }
 0x3f5   : > { %v1036_v28 = vadd.f32 1.0, %v1408_v41  ;;  %1409 = vpow2.f32 %v1279_v3 }
 0x3f6   : > { %1411 = vrcp.f32 %v1035_v54  ;;  %v1076_v48 = vand.u32 2147483647, %v1035_v54  ;;  %v1078_v55 = vand.u32 2147483648, %v1035_v54  ;;  %vm1072_vm8 = vweird.f32 %v1035_v54 }
 0x3f7   : > { %1413 = vrcp.f32 %v1036_v28  ;;  %v1093_v62 = vand.u32 2147483648, %v1036_v28  ;;  %v1091_v20 = vand.u32 2147483647, %v1036_v28  ;;  %vm1087_vm10 = vweird.f32 %v1036_v28 }
 0x3f8   : > { %1415 = vpow2.f32 %v1278_v14  ;;  %v1079_v37 = vor.u32 1.1754944e-38, %v1078_v55  ;;  %vm1077_vm11 = vcmp.eq.f32.partialorder %v1076_v48, 8.507059e+37  ;;  %v1428_v48 = vld [vmem:[%s1673_s25 + $0x18] sm:$0xff] }
 0x3f9   : > { %v1094_v39 = vor.u32 1.1754944e-38, %v1093_v62  ;;  %vm1092_vm13 = vcmp.eq.f32.partialorder %v1091_v20, 8.507059e+37 }
 0x3fb   : > { %v1410_v10 = vpop.eup %1409 }
 0x3fc   : > { %v1412_v25 = vpop.eup %1411  ;;  %v1034_v46 = vadd.f32 1.0, %v1410_v10  ;;  %v1426_v10 = vld [vmem:[%s1673_s25 + $0x8] sm:$0xff] }
 0x3fd   : > { %v1414_v58 = vpop.eup %1413  ;;  %v1068_v4 = vmul.f32 %v1412_v25, %v1035_v54  ;;  %vm1073_vm6 = vweird.f32 %v1412_v25  ;;  %v1116_v30 = vpop.permute.xlu0 %1115 }
 0x3fe   : > { %v1416_v50 = vpop.eup %1415  ;;  %1417 = vrcp.f32 %v1034_v46  ;;  %v1083_v36 = vmul.f32 %v1414_v58, %v1036_v28  ;;  %vm1088_vm7 = vweird.f32 %v1414_v58  ;;  %vm1074_vm9 = vmor %vm1072_vm8, %vm1073_vm6  ;;  %v1063_v17 = vand.u32 2147483648, %v1034_v46 }
 0x3ff   : > { %v1033_v32 = vadd.f32 1.0, %v1416_v50  ;;  %v1069_v47 = vsub.f32 1.0, %v1068_v4  ;;  %vm1089_vm12 = vmor %vm1087_vm10, %vm1088_vm7  ;;  %v1061_v19 = vand.u32 2147483647, %v1034_v46  ;;  %vm1057_vm15 = vweird.f32 %v1034_v46 }
 0x400   : > { %v1084_v24 = vsub.f32 1.0, %v1083_v36  ;;  %vm1128_vm6 = vcmask 261120  }
 0x401   : > { %1419 = vrcp.f32 %v1033_v32  ;;  %v1070_v1 = vmul.f32 %v1412_v25, %v1069_v47  ;;  %v1048_v33 = vand.u32 2147483648, %v1033_v32  ;;  %vm1062_vm2 = vcmp.eq.f32.partialorder %v1061_v19, 8.507059e+37 }
 0x402   : > { %v1085_v57 = vmul.f32 %v1414_v58, %v1084_v24  ;;  %vm1042_vm3 = vweird.f32 %v1033_v32 }
 0x403   : > { %v1071_v11 = vadd.f32 %v1412_v25, %v1070_v1 }
 0x404   : > { %v1418_v59 = vpop.eup %1417  ;;  %v1086_v18 = vadd.f32 %v1414_v58, %v1085_v57 }
 0x405   : > { %v1053_v13 = vmul.f32 %v1418_v59, %v1034_v46  ;;  %v1075_v2 = vsel %vm1074_vm9, %v1412_v25, %v1071_v11  ;;  %vm1058_vm14 = vweird.f32 %v1418_v59  ;;  %v1121_v46 = vpop.permute.xlu2 %1120 }
 0x406   : > { %v1080_v7 = vsel %vm1077_vm11, %v1079_v37, %v1075_v2  ;;  %v1090_v63 = vsel %vm1089_vm12, %v1414_v58, %v1086_v18  ;;  %vm1059_vm1 = vmor %vm1057_vm15, %vm1058_vm14 }
 0x407   : > { %v1420_v21 = vpop.eup %1419  ;;  %v1054_v51 = vsub.f32 1.0, %v1053_v13  ;;  %v1095_v49 = vsel %vm1092_vm13, %v1094_v39, %v1090_v63  ;;  %v1101_v40 = vmul.f32 %v1080_v7, %v938_v43  ;;  %v1102_v44 = vmul.f32 %v1080_v7, %v939_v60 }
 0x408   : > { %v1038_v26 = vmul.f32 %v1420_v21, %v1033_v32  ;;  %v1103_v22 = vmul.f32 %v1095_v49, %v940_v16  ;;  %v1104_v56 = vmul.f32 %v1095_v49, %v941_v45  ;;  %vm1043_vm0 = vweird.f32 %v1420_v21 }
 0x409   : > { %v1055_v8 = vmul.f32 %v1418_v59, %v1054_v51  ;;  %v1046_v43 = vand.u32 2147483647, %v1033_v32  ;;  %v1064_v60 = vor.u32 1.1754944e-38, %v1063_v17  ;;  %vm1044_vm4 = vmor %vm1042_vm3, %vm1043_vm0  ;;  %v1049_v45 = vor.u32 1.1754944e-38, %v1048_v33  ;;  %v1427_v32 = vld [vmem:[%s1673_s25 + $0x10] sm:$0xff] }
 0x40a   : > { %v1109_v9 = vpack.c.bf16 %v1103_v22, %v1101_v40  ;;  %v1110_v15 = vpack.c.bf16 %v1104_v56, %v1102_v44  ;;  %v1039_v34 = vsub.f32 1.0, %v1038_v26 }
 0x40b   : > { %v1056_v29 = vadd.f32 %v1418_v59, %v1055_v8  ;;  %vm1047_vm5 = vcmp.eq.f32.partialorder %v1046_v43, 8.507059e+37 }
 0x40c   : > { %1138 = vmatpush.bf16.msra.mxu2 %v1109_v9  ;;  %1152 = vmatpush.bf16.msra.mxu3 %v1110_v15  ;;  %v1040_v53 = vmul.f32 %v1420_v21, %v1039_v34 }
 0x40d   : > { %v1060_v6 = vsel %vm1059_vm1, %v1418_v59, %v1056_v29 }
 0x40e   : > { %v1041_v27 = vadd.f32 %v1420_v21, %v1040_v53  ;;  %v1065_v16 = vsel %vm1062_vm2, %v1064_v60, %v1060_v6 }
 0x40f   : > { %v1099_v3 = vmul.f32 %v1065_v16, %v936_v5  ;;  %v1100_v41 = vmul.f32 %v1065_v16, %v937_v23 }
 0x410   : > { %v1045_v35 = vsel %vm1044_vm4, %v1420_v21, %v1041_v27 }
 0x411   : > { %v1050_v54 = vsel %vm1047_vm5, %v1049_v45, %v1045_v35 }
 0x412   : > { %v1097_v14 = vmul.f32 %v1050_v54, %v934_v0  ;;  %v1098_v28 = vmul.f32 %v1050_v54, %v935_v52  ;;  %v1425_v52 = vld [vmem:[%s1673_s25] sm:$0xff] }
 0x414   : > { %v1107_v12 = vpack.c.bf16 %v1099_v3, %v1097_v14  ;;  %v1108_v31 = vpack.c.bf16 %v1100_v41, %v1098_v28 }
 0x416   : > { %1139 = vmatpush.bf16.msra.mxu2 %v1107_v12  ;;  %1153 = vmatpush.bf16.msra.mxu3 %v1108_v31 }
 0x419   : > { %1286 = vmatmul.msk.bf16.vlgmr.msra.gmra.mxu2 %vm1128_vm6, %v1296_v38  ;;  %1287 = vmatmul.msk.bf16.vlgmr.msra.gmra.mxu3 %vm1128_vm6, %v1296_v38 }
 0x49c   : > { %v1141_v42 = vpop.f32.mrf.mxu2  ;;  %v1155_v0 = vpop.f32.mrf.mxu3 }
 0x49d   : > { %v1142_v5 = vadd.f32 %v1141_v42, %v1116_v30  ;;  %v1156_v61 = vadd.f32 %v1155_v0, %v1116_v30 }
 0x49f   : > { %v1160_v23 = vadd.f32 %v1425_v52, %v1142_v5  ;;  %v1161_v25 = vadd.f32 %v1426_v10, %v1156_v61 }
 0x4a1   : > { %1164 = vst [vmem:[%s244_s11] sm:$0xff] %v1160_v23 }
 0x4a2   : > { %1165 = vst [vmem:[%s244_s11 + $0x8] sm:$0xff] %v1161_v25 }
 0x4a4   : > { %v1143_v58 = vpop.f32.mrf.mxu2  ;;  %v1157_v4 = vpop.f32.mrf.mxu3 }
 0x4a5   : > { %v1144_v50 = vadd.f32 %v1143_v58, %v1121_v46  ;;  %v1158_v36 = vadd.f32 %v1157_v4, %v1121_v46 }
 0x4a7   : > { %v1162_v47 = vadd.f32 %v1427_v32, %v1144_v50  ;;  %v1163_v55 = vadd.f32 %v1428_v48, %v1158_v36 }
 0x4a9   : > { %1166 = vst [vmem:[%s244_s11 + $0x10] sm:$0xff] %v1162_v47 }
 0x4aa   : > { %1167 = vst [vmem:[%s244_s11 + $0x18] sm:$0xff] %v1163_v55 }
 0x4ab   : > { %1486 = shalt.err (!%p1483_p4)
}
 0x4ac   : > { %s1550_s12 = smov 256  }
 0x4ad   : > { %1300 = dma.vmem_to_hbm [thread:$0]  (%p1631_p11), %s1182_s17, 512, %s1184_s29, %s1169_s22, %s1550_s12, %s1550_s12, %s1535_s23  }
 0x4ae PF: > { %s1198_s25 = sand.u32 1, %s1513_s18   ;;  %p2516_p7 = scmp.ge.s32.totalorder %s1525_s21, 2 }
 0x4af   : > { %s1199_s11 = scalar_lea.sflag [#allocation4], %s1198_s25 }
 0x4b0   : > { %p1307_p5 = pnand %p2516_p7, %p1635_p12 }
 0x4b2   : > { %p1308_p8 = pneg %p1307_p5 }
 0x4b4   : > { %1508 = dma.done.wait (%p1308_p8), %s1199_s11, 512  }
 0x4b5   : > { %1510 = vsyncadd (%p1308_p8), %s1199_s11, 4294966784  ;;  %p18_p10 = scmp.ge.s32.totalorder %s1606_s24, 4   ;;  %s2517_s18 = smov %s1517_s19 }
 0x4b6   : > { %s2518_s19 = smov %s1521_s20  ;;  %s2519_s20 = smov %s1618_s27 }
 0x4b7   : > { %s2520_s21 = smov %s1606_s24  ;;  %20 = sbr.rel (!%p18_p10) target bundleno = 5 (0x5), region = 85 }
 0x4bc   :  { %1205 = vsyncpa [#allocation3], 1 }
 0x4bd   :  { %1207 = vsyncpa [#allocation3 + $0x1], 1 }
 0x4be   :  { %1208 = vsyncpa [#allocation4], 1 }
 0x4bf   :  { %1210 = vsyncpa [#allocation4 + $0x1], 1 }

</bundles_post_ra>
